<compile_context>
chip_gen: v7x
topology: tpu7x:2x2x1
jax: 0.10.0
libtpu: 0.0.40
codegen_flags: <defaults>
</compile_context>

<pallas_src>
import functools

import jax
import jax.numpy as jnp
from jax import lax
from jax.experimental import pallas as pl
from jax.experimental.pallas import tpu as pltpu

K = 5          # conv kernel size
PAD = 2        # conv padding
EPS = 1e-5     # BatchNorm1d default eps

# MXU input dtype for the conv matmuls (weights + padded activations).  Set to
# jnp.bfloat16 on v6e/v7x for ~2x matmul throughput; accumulation stays f32 either
# way (loosen the tolerance check accordingly).
MXU_DTYPE = jnp.float32


@functools.lru_cache(maxsize=None)
def _vmem_limit_bytes():
    cap = 128 * 1024 * 1024
    try:
        cap = int(pltpu.get_tpu_info().vmem_capacity_bytes)
    except Exception:
        pass
    # ~75% of physical VMEM, capped at 100 MiB:
    #   v5e/v6e (128 MiB) -> 96 MiB ;  v7x (64 MiB) -> 48 MiB.
    return min(cap * 3 // 4, 100 * 1024 * 1024)


def _compiler_params():
    return pltpu.CompilerParams(
        dimension_semantics=("parallel",),      # batch tiles are independent
        vmem_limit_bytes=_vmem_limit_bytes(),
    )


def _pick_samples_per_step(n, bytes_per_sample):
    """Largest divisor B of n whose per-step working set fits a conservative VMEM
    budget while keeping >=2 grid steps (both v7x TensorCores busy)."""
    budget = _vmem_limit_bytes() // 4           # headroom: double-buffering, weights, scratch
    best = 1
    for b in range(1, n + 1):
        if n % b:
            continue
        if n >= 2 and (n // b) < 2:
            continue
        if b * bytes_per_sample <= budget:
            best = b
    return best


def _make_conv_kernel(pre_bn: bool, B: int, cin: int, cout: int, L: int):
    """[optional BN+ReLU of input] -> Conv1d(k=5, p=2) -> (y, fused sum/sumsq stats)."""

    def body(x_ref, scale_ref, shift_ref, w_ref, y_ref, stats_ref, pad_ref):
        # Zero-halo scratch: zero the two PAD-wide halos each step (cheap; the
        # interior is overwritten per sample below).  No jnp.pad, no full copy.
        zero_halo = jnp.zeros((cin, PAD), pad_ref.dtype)
        pad_ref[:, :PAD] = zero_halo
        pad_ref[:, PAD + L:] = zero_halo

        s_acc = jnp.zeros((cout, 1), jnp.float32)
        q_acc = jnp.zeros((cout, 1), jnp.float32)

        for b in range(B):                                    # static, B is small
            x = x_ref[b].astype(jnp.float32)                  # (Cin, L), lane-dense
            if pre_bn:
                # Previous layer's BatchNorm (global stats folded to affine) + ReLU.
                x = jnp.maximum(x * scale_ref[...] + shift_ref[...], 0.0)
            pad_ref[:, PAD:PAD + L] = (
                x if x.dtype == pad_ref.dtype else x.astype(pad_ref.dtype))

            # Conv as K accumulating MXU matmuls over the zero-padded activation:
            # no (K*Cin, L) im2col materialization; tap sum stays in f32.
            y = jnp.dot(w_ref[0], pad_ref[:, 0:L],
                        preferred_element_type=jnp.float32)
            for k in range(1, K):
                y = y + jnp.dot(w_ref[k], pad_ref[:, k:k + L],
                                preferred_element_type=jnp.float32)
            # Conv bias intentionally omitted: exactly cancelled by train-mode BN.

            y_ref[b] = y.astype(y_ref.dtype)                  # (Cout, L) lane-dense

            # Per-channel BN-stat partials on the XLU (MXU stays free for the conv).
            s_acc = s_acc + jnp.sum(y, axis=-1, keepdims=True)
            q_acc = q_acc + jnp.sum(y * y, axis=-1, keepdims=True)

        # Single fused stats output per step: [sum ; sumsq] -> (2*Cout, 1).
        stats_ref[0] = jnp.concatenate([s_acc, q_acc], axis=0)

    if pre_bn:
        def kernel(x_ref, scale_ref, shift_ref, w_ref, y_ref, stats_ref, pad_ref):
            body(x_ref, scale_ref, shift_ref, w_ref, y_ref, stats_ref, pad_ref)
    else:
        def kernel(x_ref, w_ref, y_ref, stats_ref, pad_ref):
            body(x_ref, None, None, w_ref, y_ref, stats_ref, pad_ref)
    return kernel


def _bn_relu_kernel(y_ref, scale_ref, shift_ref, o_ref):
    y = y_ref[...].astype(jnp.float32)                        # (B, Cout, L)
    o_ref[...] = jnp.maximum(y * scale_ref[...] + shift_ref[...], 0.0).astype(o_ref.dtype)


def _full_spec(shape):
    nd = len(shape)
    return pl.BlockSpec(shape, lambda *_: (0,) * nd)


def _conv_bn_stats(x, w, scale=None, shift=None):
    """[optional BN+ReLU] -> Conv1d(k=5, p=2).  Returns (y, stats=(tiles, 2*Cout, 1))."""
    N, cin, L = x.shape
    k_, cout, cin_w = w.shape
    assert k_ == K and cin_w == cin
    pre_bn = scale is not None

    B = _pick_samples_per_step(N, 4 * L * (cin + cout))
    tiles = N // B

    in_arrays = [x]
    in_specs = [pl.BlockSpec((B, cin, L), lambda n: (n, 0, 0))]
    if pre_bn:
        in_arrays += [scale, shift]
        in_specs += [_full_spec((cin, 1)), _full_spec((cin, 1))]
    in_arrays += [w]
    in_specs += [_full_spec((K, cout, cin))]                  # weights hoisted (constant block)

    out_shape = (jax.ShapeDtypeStruct((N, cout, L), jnp.float32),
                 jax.ShapeDtypeStruct((tiles, 2 * cout, 1), jnp.float32))
    out_specs = (pl.BlockSpec((B, cout, L), lambda n: (n, 0, 0)),
                 pl.BlockSpec((1, 2 * cout, 1), lambda n: (n, 0, 0)))

    return pl.pallas_call(
        _make_conv_kernel(pre_bn, B, cin, cout, L),
        grid=(tiles,),
        in_specs=in_specs,
        out_specs=out_specs,
        out_shape=out_shape,
        scratch_shapes=[pltpu.VMEM((cin, L + 2 * PAD), MXU_DTYPE)],
        compiler_params=_compiler_params(),
    )(*in_arrays)


def _bn_relu(y, scale, shift):
    N, cout, L = y.shape
    B = _pick_samples_per_step(N, 2 * 4 * cout * L)
    tiles = N // B

    return pl.pallas_call(
        _bn_relu_kernel,
        grid=(tiles,),
        in_specs=[pl.BlockSpec((B, cout, L), lambda n: (n, 0, 0)),
                  _full_spec((cout, 1)), _full_spec((cout, 1))],
        out_specs=pl.BlockSpec((B, cout, L), lambda n: (n, 0, 0)),
        out_shape=jax.ShapeDtypeStruct((N, cout, L), jnp.float32),
        input_output_aliases={0: 0},          # rewrite y in place (no extra HBM buffer)
        compiler_params=_compiler_params(),
    )(y, scale, shift)


def _bn_affine(stats, count, gamma, beta):
    """Reduce per-tile partials -> global batch stats -> folded (scale, shift)."""
    cout = gamma.shape[0]
    tot = jnp.sum(stats, axis=0)                               # (2*Cout, 1)
    mean = tot[:cout] / count
    ex2 = tot[cout:] / count
    var = jnp.maximum(ex2 - mean * mean, 0.0)                  # clamp: E[x^2]-E[x]^2 cancellation
    inv_std = lax.rsqrt(var + EPS)
    scale = gamma.reshape(-1, 1) * inv_std
    shift = beta.reshape(-1, 1) - mean * scale
    return scale, shift


@jax.jit
def double_conv_pallas(x, params):
    """x: (N, Cin, L) float32, PyTorch NCL layout.  Returns (N, Cout, L) float32."""
    w1, b1, g1, be1, w2, b2, g2, be2 = params
    # b1/b2 are not fed to the kernels: train-mode BN right after each conv subtracts
    # the batch mean, which cancels a per-channel bias exactly (forward no-op).
    del b1, b2
    N, _, L = x.shape
    count = N * L

    y1, st1 = _conv_bn_stats(x, w1)                 # conv1 + BN1 partial stats
    sc1, sh1 = _bn_affine(st1, count, g1, be1)
    y2, st2 = _conv_bn_stats(y1, w2, sc1, sh1)      # BN1+ReLU+conv2 + BN2 partial stats
    sc2, sh2 = _bn_affine(st2, count, g2, be2)
    return _bn_relu(y2, sc2, sh2)                   # BN2 + ReLU (in place on y2)


def init_params(key, in_ch, out_ch):
    """Deterministic init mirroring nn.Conv1d / nn.BatchNorm1d defaults."""
    k1, k2, k3, k4 = jax.random.split(key, 4)

    def conv_init(kw, kb, cin, cout):
        fan_in = cin * K
        bound = (1.0 / fan_in) ** 0.5
        w_pt = jax.random.uniform(kw, (cout, cin, K), jnp.float32, -bound, bound)
        b = jax.random.uniform(kb, (cout,), jnp.float32, -bound, bound)
        # Tap-major layout (K, Cout, Cin): w[k] is the (Cout, Cin) MXU tile for tap k.
        w = jnp.transpose(w_pt, (2, 0, 1)).astype(MXU_DTYPE)
        return w, b

    w1, b1 = conv_init(k1, k2, in_ch, out_ch)
    w2, b2 = conv_init(k3, k4, out_ch, out_ch)
    g1 = jnp.ones((out_ch,), jnp.float32)    # BatchNorm default weight=1
    be1 = jnp.zeros((out_ch,), jnp.float32)  # BatchNorm default bias=0
    g2 = jnp.ones((out_ch,), jnp.float32)
    be2 = jnp.zeros((out_ch,), jnp.float32)
    return (w1, b1, g1, be1, w2, b2, g2, be2)


def double_conv_ref(x_ncl, params):
    """Independent pure-JAX reference (lax.conv_general_dilated, NCL, train-mode BN)."""
    w1, b1, g1, be1, w2, b2, g2, be2 = params

    def conv(x, w, b):
        w_oih = jnp.transpose(w.astype(jnp.float32), (1, 2, 0))   # (Cout, Cin, K)
        y = lax.conv_general_dilated(
            x, w_oih, window_strides=(1,), padding=[(PAD, PAD)],
            dimension_numbers=('NCH', 'OIH', 'NCH'))
        return y + b.reshape(1, -1, 1)

    def bn_relu(y, g, be):
        mean = jnp.mean(y, axis=(0, 2), keepdims=True)
        var = jnp.mean((y - mean) ** 2, axis=(0, 2), keepdims=True)
        h = (y - mean) / jnp.sqrt(var + EPS) * g.reshape(1, -1, 1) + be.reshape(1, -1, 1)
        return jnp.maximum(h, 0.0)

    h = bn_relu(conv(x_ncl, w1, b1), g1, be1)
    return bn_relu(conv(h, w2, b2), g2, be2)


if __name__ == "__main__":
    key = jax.random.PRNGKey(0)
    kx, kp = jax.random.split(key)

    N, in_ch, out_ch, L = 2, 4, 8, 16
    x = jax.random.normal(kx, (N, in_ch, L), jnp.float32)
    params = init_params(kp, in_ch, out_ch)

    out = jax.block_until_ready(double_conv_pallas(x, params))

    ref = double_conv_ref(x, params)
    assert out.shape == (N, out_ch, L)
    err = float(jnp.max(jnp.abs(out - ref)))
    assert jnp.allclose(out, ref, atol=1e-4, rtol=1e-4), f"max abs err {err}"

    print("KERNEL_OK")
</pallas_src>

<mosaic_0001>
module attributes {stable_mosaic.version = 11 : i64} {
  func.func @kernel(%arg0: i32, %arg1: memref<1x4x16xf32, #tpu.memory_space<vmem>>, %arg2: memref<5x8x4xf32, #tpu.memory_space<vmem>>, %arg3: memref<1x8x16xf32, #tpu.memory_space<vmem>>, %arg4: memref<1x16x1xf32, #tpu.memory_space<vmem>>, %arg5: memref<4x20xf32, #tpu.memory_space<vmem>>) attributes {dimension_semantics = [#tpu.dimension_semantics<parallel>], iteration_bounds = array<i64: 2>, scalar_prefetch = 0 : i64, scratch_operands = 1 : i64, tpu.core_type = #tpu.core_type<tc>, window_params = [{transform_indices = @transform_0, window_bounds = array<i64: 1, 4, 16>}, {pipeline_mode = #tpu.pipeline_mode<synchronous>, transform_indices = @transform_1, window_bounds = array<i64: 5, 8, 4>}, {transform_indices = @transform_2, window_bounds = array<i64: 1, 8, 16>}, {transform_indices = @transform_3, window_bounds = array<i64: 1, 16, 1>}]} {
    %cst = arith.constant 0.000000e+00 : f32
    %0 = vector.broadcast %cst : f32 to vector<4x2xf32>
    %c0 = arith.constant 0 : index
    %c0_0 = arith.constant 0 : index
    %1 = vector.load %arg5[%c0, %c0_0] : memref<4x20xf32, #tpu.memory_space<vmem>>, vector<4x2xf32>
    tpu.vector_store %arg5[%c0, %c0_0], %0 {strides = array<i32>} : memref<4x20xf32, #tpu.memory_space<vmem>>, vector<4x2xf32>,
    %c0_1 = arith.constant 0 : index
    %c18 = arith.constant 18 : index
    %2 = vector.load %arg5[%c0_1, %c18] : memref<4x20xf32, #tpu.memory_space<vmem>>, vector<4x2xf32>
    tpu.vector_store %arg5[%c0_1, %c18], %0 {strides = array<i32>} : memref<4x20xf32, #tpu.memory_space<vmem>>, vector<4x2xf32>,
    %cst_2 = arith.constant 0.000000e+00 : f32
    %3 = vector.broadcast %cst_2 : f32 to vector<8x1xf32>
    %cst_3 = arith.constant 0.000000e+00 : f32
    %4 = vector.broadcast %cst_3 : f32 to vector<8x1xf32>
    %c0_4 = arith.constant 0 : index
    %c0_5 = arith.constant 0 : index
    %c0_6 = arith.constant 0 : index
    %5 = vector.load %arg1[%c0_4, %c0_5, %c0_6] : memref<1x4x16xf32, #tpu.memory_space<vmem>>, vector<1x4x16xf32>
    %6 = vector.shape_cast %5 : vector<1x4x16xf32> to vector<4x16xf32>
    %c0_7 = arith.constant 0 : index
    %c2 = arith.constant 2 : index
    %7 = vector.load %arg5[%c0_7, %c2] : memref<4x20xf32, #tpu.memory_space<vmem>>, vector<4x16xf32>
    tpu.vector_store %arg5[%c0_7, %c2], %6 {strides = array<i32>} : memref<4x20xf32, #tpu.memory_space<vmem>>, vector<4x16xf32>,
    %c0_8 = arith.constant 0 : index
    %c0_9 = arith.constant 0 : index
    %c0_10 = arith.constant 0 : index
    %8 = vector.load %arg2[%c0_8, %c0_9, %c0_10] : memref<5x8x4xf32, #tpu.memory_space<vmem>>, vector<1x8x4xf32>
    %9 = vector.shape_cast %8 : vector<1x8x4xf32> to vector<8x4xf32>
    %c0_11 = arith.constant 0 : index
    %c0_12 = arith.constant 0 : index
    %10 = vector.load %arg5[%c0_11, %c0_12] : memref<4x20xf32, #tpu.memory_space<vmem>>, vector<4x16xf32>
    %cst_13 = arith.constant dense<0.000000e+00> : vector<8x16xf32>
    %11 = tpu.matmul %9, %10, %cst_13 {dimension_numbers = #tpu.dot_dimension_numbers<[1], [0], [0], [1], [0, 0, 1, 1], [], []>} : vector<8x4xf32>, vector<4x16xf32>, vector<8x16xf32> -> vector<8x16xf32>
    %c1 = arith.constant 1 : index
    %c0_14 = arith.constant 0 : index
    %c0_15 = arith.constant 0 : index
    %12 = vector.load %arg2[%c1, %c0_14, %c0_15] : memref<5x8x4xf32, #tpu.memory_space<vmem>>, vector<1x8x4xf32>
    %13 = vector.shape_cast %12 : vector<1x8x4xf32> to vector<8x4xf32>
    %c0_16 = arith.constant 0 : index
    %c1_17 = arith.constant 1 : index
    %14 = vector.load %arg5[%c0_16, %c1_17] : memref<4x20xf32, #tpu.memory_space<vmem>>, vector<4x16xf32>
    %cst_18 = arith.constant dense<0.000000e+00> : vector<8x16xf32>
    %15 = tpu.matmul %13, %14, %cst_18 {dimension_numbers = #tpu.dot_dimension_numbers<[1], [0], [0], [1], [0, 0, 1, 1], [], []>} : vector<8x4xf32>, vector<4x16xf32>, vector<8x16xf32> -> vector<8x16xf32>
    %16 = arith.addf %11, %15 : vector<8x16xf32>
    %c2_19 = arith.constant 2 : index
    %c0_20 = arith.constant 0 : index
    %c0_21 = arith.constant 0 : index
    %17 = vector.load %arg2[%c2_19, %c0_20, %c0_21] : memref<5x8x4xf32, #tpu.memory_space<vmem>>, vector<1x8x4xf32>
    %18 = vector.shape_cast %17 : vector<1x8x4xf32> to vector<8x4xf32>
    %c0_22 = arith.constant 0 : index
    %c2_23 = arith.constant 2 : index
    %19 = vector.load %arg5[%c0_22, %c2_23] : memref<4x20xf32, #tpu.memory_space<vmem>>, vector<4x16xf32>
    %cst_24 = arith.constant dense<0.000000e+00> : vector<8x16xf32>
    %20 = tpu.matmul %18, %19, %cst_24 {dimension_numbers = #tpu.dot_dimension_numbers<[1], [0], [0], [1], [0, 0, 1, 1], [], []>} : vector<8x4xf32>, vector<4x16xf32>, vector<8x16xf32> -> vector<8x16xf32>
    %21 = arith.addf %16, %20 : vector<8x16xf32>
    %c3 = arith.constant 3 : index
    %c0_25 = arith.constant 0 : index
    %c0_26 = arith.constant 0 : index
    %22 = vector.load %arg2[%c3, %c0_25, %c0_26] : memref<5x8x4xf32, #tpu.memory_space<vmem>>, vector<1x8x4xf32>
    %23 = vector.shape_cast %22 : vector<1x8x4xf32> to vector<8x4xf32>
    %c0_27 = arith.constant 0 : index
    %c3_28 = arith.constant 3 : index
    %24 = vector.load %arg5[%c0_27, %c3_28] : memref<4x20xf32, #tpu.memory_space<vmem>>, vector<4x16xf32>
    %cst_29 = arith.constant dense<0.000000e+00> : vector<8x16xf32>
    %25 = tpu.matmul %23, %24, %cst_29 {dimension_numbers = #tpu.dot_dimension_numbers<[1], [0], [0], [1], [0, 0, 1, 1], [], []>} : vector<8x4xf32>, vector<4x16xf32>, vector<8x16xf32> -> vector<8x16xf32>
    %26 = arith.addf %21, %25 : vector<8x16xf32>
    %c4 = arith.constant 4 : index
    %c0_30 = arith.constant 0 : index
    %c0_31 = arith.constant 0 : index
    %27 = vector.load %arg2[%c4, %c0_30, %c0_31] : memref<5x8x4xf32, #tpu.memory_space<vmem>>, vector<1x8x4xf32>
    %28 = vector.shape_cast %27 : vector<1x8x4xf32> to vector<8x4xf32>
    %c0_32 = arith.constant 0 : index
    %c4_33 = arith.constant 4 : index
    %29 = vector.load %arg5[%c0_32, %c4_33] : memref<4x20xf32, #tpu.memory_space<vmem>>, vector<4x16xf32>
    %cst_34 = arith.constant dense<0.000000e+00> : vector<8x16xf32>
    %30 = tpu.matmul %28, %29, %cst_34 {dimension_numbers = #tpu.dot_dimension_numbers<[1], [0], [0], [1], [0, 0, 1, 1], [], []>} : vector<8x4xf32>, vector<4x16xf32>, vector<8x16xf32> -> vector<8x16xf32>
    %31 = arith.addf %26, %30 : vector<8x16xf32>
    %c0_35 = arith.constant 0 : index
    %c0_36 = arith.constant 0 : index
    %c0_37 = arith.constant 0 : index
    %32 = vector.load %arg3[%c0_35, %c0_36, %c0_37] : memref<1x8x16xf32, #tpu.memory_space<vmem>>, vector<1x8x16xf32>
    %33 = vector.shape_cast %32 : vector<1x8x16xf32> to vector<8x16xf32>
    %34 = vector.shape_cast %31 : vector<8x16xf32> to vector<1x8x16xf32>
    tpu.vector_store %arg3[%c0_35, %c0_36, %c0_37], %34 {strides = array<i32>} : memref<1x8x16xf32, #tpu.memory_space<vmem>>, vector<1x8x16xf32>,
    %cst_38 = arith.constant dense<0.000000e+00> : vector<8xf32>
    %35 = vector.multi_reduction <add>, %31, %cst_38 [1] : vector<8x16xf32> to vector<8xf32>
    %36 = vector.shape_cast %35 : vector<8xf32> to vector<8x1xf32>
    %37 = arith.addf %3, %36 : vector<8x1xf32>
    %38 = arith.mulf %31, %31 : vector<8x16xf32>
    %cst_39 = arith.constant dense<0.000000e+00> : vector<8xf32>
    %39 = vector.multi_reduction <add>, %38, %cst_39 [1] : vector<8x16xf32> to vector<8xf32>
    %40 = vector.shape_cast %39 : vector<8xf32> to vector<8x1xf32>
    %41 = arith.addf %4, %40 : vector<8x1xf32>
    %42 = tpu.concatenate %37, %41 in 0 : vector<8x1xf32>, vector<8x1xf32> -> vector<16x1xf32>
    %c0_40 = arith.constant 0 : index
    %c0_41 = arith.constant 0 : index
    %c0_42 = arith.constant 0 : index
    %43 = vector.load %arg4[%c0_40, %c0_41, %c0_42] : memref<1x16x1xf32, #tpu.memory_space<vmem>>, vector<1x16x1xf32>
    %44 = vector.shape_cast %43 : vector<1x16x1xf32> to vector<16x1xf32>
    %45 = vector.shape_cast %42 : vector<16x1xf32> to vector<1x16x1xf32>
    tpu.vector_store %arg4[%c0_40, %c0_41, %c0_42], %45 {strides = array<i32>} : memref<1x16x1xf32, #tpu.memory_space<vmem>>, vector<1x16x1xf32>,
    return
  }
  func.func @transform_0(%arg0: i32) -> (i32, i32, i32) {
    %c0_i32 = arith.constant 0 : i32
    %c0_i32_0 = arith.constant 0 : i32
    %c0_i32_1 = arith.constant 0 : i32
    return %arg0, %c0_i32, %c0_i32_0 : i32, i32, i32
  }
  func.func @transform_1(%arg0: i32) -> (i32, i32, i32) {
    %c0_i32 = arith.constant 0 : i32
    %c0_i32_0 = arith.constant 0 : i32
    %c0_i32_1 = arith.constant 0 : i32
    %c0_i32_2 = arith.constant 0 : i32
    return %c0_i32, %c0_i32_0, %c0_i32_1 : i32, i32, i32
  }
  func.func @transform_2(%arg0: i32) -> (i32, i32, i32) {
    %c0_i32 = arith.constant 0 : i32
    %c0_i32_0 = arith.constant 0 : i32
    %c0_i32_1 = arith.constant 0 : i32
    return %arg0, %c0_i32, %c0_i32_0 : i32, i32, i32
  }
  func.func @transform_3(%arg0: i32) -> (i32, i32, i32) {
    %c0_i32 = arith.constant 0 : i32
    %c0_i32_0 = arith.constant 0 : i32
    %c0_i32_1 = arith.constant 0 : i32
    return %arg0, %c0_i32, %c0_i32_0 : i32, i32, i32
  }
}

module attributes {stable_mosaic.version = 11 : i64} {
  func.func @_bn_relu_kernel(%arg0: i32, %arg1: memref<1x8x16xf32, #tpu.memory_space<vmem>>, %arg2: memref<8x1xf32, #tpu.memory_space<vmem>>, %arg3: memref<8x1xf32, #tpu.memory_space<vmem>>, %arg4: memref<1x8x16xf32, #tpu.memory_space<vmem>>) attributes {dimension_semantics = [#tpu.dimension_semantics<parallel>], iteration_bounds = array<i64: 2>, scalar_prefetch = 0 : i64, scratch_operands = 0 : i64, tpu.core_type = #tpu.core_type<tc>, window_params = [{transform_indices = @transform_0, window_bounds = array<i64: 1, 8, 16>}, {pipeline_mode = #tpu.pipeline_mode<synchronous>, transform_indices = @transform_1, window_bounds = array<i64: 8, 1>}, {pipeline_mode = #tpu.pipeline_mode<synchronous>, transform_indices = @transform_2, window_bounds = array<i64: 8, 1>}, {transform_indices = @transform_3, window_bounds = array<i64: 1, 8, 16>}]} {
    %c0 = arith.constant 0 : index
    %c0_0 = arith.constant 0 : index
    %c0_1 = arith.constant 0 : index
    %0 = vector.load %arg1[%c0, %c0_0, %c0_1] : memref<1x8x16xf32, #tpu.memory_space<vmem>>, vector<1x8x16xf32>
    %c0_2 = arith.constant 0 : index
    %c0_3 = arith.constant 0 : index
    %1 = vector.load %arg2[%c0_2, %c0_3] : memref<8x1xf32, #tpu.memory_space<vmem>>, vector<8x1xf32>
    %2 = vector.shape_cast %1 : vector<8x1xf32> to vector<1x8x1xf32>
    %3 = vector.broadcast %2 : vector<1x8x1xf32> to vector<1x8x16xf32>
    %4 = arith.mulf %0, %3 : vector<1x8x16xf32>
    %c0_4 = arith.constant 0 : index
    %c0_5 = arith.constant 0 : index
    %5 = vector.load %arg3[%c0_4, %c0_5] : memref<8x1xf32, #tpu.memory_space<vmem>>, vector<8x1xf32>
    %6 = vector.shape_cast %5 : vector<8x1xf32> to vector<1x8x1xf32>
    %7 = vector.broadcast %6 : vector<1x8x1xf32> to vector<1x8x16xf32>
    %8 = arith.addf %4, %7 : vector<1x8x16xf32>
    %cst = arith.constant 0.000000e+00 : f32
    %9 = vector.broadcast %cst : f32 to vector<1x8x16xf32>
    %10 = arith.maximumf %8, %9 : vector<1x8x16xf32>
    %c0_6 = arith.constant 0 : index
    %c0_7 = arith.constant 0 : index
    %c0_8 = arith.constant 0 : index
    %11 = vector.load %arg4[%c0_6, %c0_7, %c0_8] : memref<1x8x16xf32, #tpu.memory_space<vmem>>, vector<1x8x16xf32>
    tpu.vector_store %arg4[%c0_6, %c0_7, %c0_8], %10 {strides = array<i32>} : memref<1x8x16xf32, #tpu.memory_space<vmem>>, vector<1x8x16xf32>,
    return
  }
  func.func @transform_0(%arg0: i32) -> (i32, i32, i32) {
    %c0_i32 = arith.constant 0 : i32
    %c0_i32_0 = arith.constant 0 : i32
    %c0_i32_1 = arith.constant 0 : i32
    return %arg0, %c0_i32, %c0_i32_0 : i32, i32, i32
  }
  func.func @transform_1(%arg0: i32) -> (i32, i32) {
    %c0_i32 = arith.constant 0 : i32
    %c0_i32_0 = arith.constant 0 : i32
    %c0_i32_1 = arith.constant 0 : i32
    return %c0_i32, %c0_i32_0 : i32, i32
  }
  func.func @transform_2(%arg0: i32) -> (i32, i32) {
    %c0_i32 = arith.constant 0 : i32
    %c0_i32_0 = arith.constant 0 : i32
    %c0_i32_1 = arith.constant 0 : i32
    return %c0_i32, %c0_i32_0 : i32, i32
  }
  func.func @transform_3(%arg0: i32) -> (i32, i32, i32) {
    %c0_i32 = arith.constant 0 : i32
    %c0_i32_0 = arith.constant 0 : i32
    %c0_i32_1 = arith.constant 0 : i32
    return %arg0, %c0_i32, %c0_i32_0 : i32, i32, i32
  }
}

module attributes {stable_mosaic.version = 11 : i64} {
  func.func @kernel(%arg0: i32, %arg1: memref<1x8x16xf32, #tpu.memory_space<vmem>>, %arg2: memref<8x1xf32, #tpu.memory_space<vmem>>, %arg3: memref<8x1xf32, #tpu.memory_space<vmem>>, %arg4: memref<5x8x8xf32, #tpu.memory_space<vmem>>, %arg5: memref<1x8x16xf32, #tpu.memory_space<vmem>>, %arg6: memref<1x16x1xf32, #tpu.memory_space<vmem>>, %arg7: memref<8x20xf32, #tpu.memory_space<vmem>>) attributes {dimension_semantics = [#tpu.dimension_semantics<parallel>], iteration_bounds = array<i64: 2>, scalar_prefetch = 0 : i64, scratch_operands = 1 : i64, tpu.core_type = #tpu.core_type<tc>, window_params = [{transform_indices = @transform_0, window_bounds = array<i64: 1, 8, 16>}, {pipeline_mode = #tpu.pipeline_mode<synchronous>, transform_indices = @transform_1, window_bounds = array<i64: 8, 1>}, {pipeline_mode = #tpu.pipeline_mode<synchronous>, transform_indices = @transform_2, window_bounds = array<i64: 8, 1>}, {pipeline_mode = #tpu.pipeline_mode<synchronous>, transform_indices = @transform_3, window_bounds = array<i64: 5, 8, 8>}, {transform_indices = @transform_4, window_bounds = array<i64: 1, 8, 16>}, {transform_indices = @transform_5, window_bounds = array<i64: 1, 16, 1>}]} {
    %cst = arith.constant 0.000000e+00 : f32
    %0 = vector.broadcast %cst : f32 to vector<8x2xf32>
    %c0 = arith.constant 0 : index
    %c0_0 = arith.constant 0 : index
    %1 = vector.load %arg7[%c0, %c0_0] : memref<8x20xf32, #tpu.memory_space<vmem>>, vector<8x2xf32>
    tpu.vector_store %arg7[%c0, %c0_0], %0 {strides = array<i32>} : memref<8x20xf32, #tpu.memory_space<vmem>>, vector<8x2xf32>,
    %c0_1 = arith.constant 0 : index
    %c18 = arith.constant 18 : index
    %2 = vector.load %arg7[%c0_1, %c18] : memref<8x20xf32, #tpu.memory_space<vmem>>, vector<8x2xf32>
    tpu.vector_store %arg7[%c0_1, %c18], %0 {strides = array<i32>} : memref<8x20xf32, #tpu.memory_space<vmem>>, vector<8x2xf32>,
    %cst_2 = arith.constant 0.000000e+00 : f32
    %3 = vector.broadcast %cst_2 : f32 to vector<8x1xf32>
    %cst_3 = arith.constant 0.000000e+00 : f32
    %4 = vector.broadcast %cst_3 : f32 to vector<8x1xf32>
    %c0_4 = arith.constant 0 : index
    %c0_5 = arith.constant 0 : index
    %c0_6 = arith.constant 0 : index
    %5 = vector.load %arg1[%c0_4, %c0_5, %c0_6] : memref<1x8x16xf32, #tpu.memory_space<vmem>>, vector<1x8x16xf32>
    %6 = vector.shape_cast %5 : vector<1x8x16xf32> to vector<8x16xf32>
    %c0_7 = arith.constant 0 : index
    %c0_8 = arith.constant 0 : index
    %7 = vector.load %arg2[%c0_7, %c0_8] : memref<8x1xf32, #tpu.memory_space<vmem>>, vector<8x1xf32>
    %8 = vector.broadcast %7 : vector<8x1xf32> to vector<8x16xf32>
    %9 = arith.mulf %6, %8 : vector<8x16xf32>
    %c0_9 = arith.constant 0 : index
    %c0_10 = arith.constant 0 : index
    %10 = vector.load %arg3[%c0_9, %c0_10] : memref<8x1xf32, #tpu.memory_space<vmem>>, vector<8x1xf32>
    %11 = vector.broadcast %10 : vector<8x1xf32> to vector<8x16xf32>
    %12 = arith.addf %9, %11 : vector<8x16xf32>
    %cst_11 = arith.constant 0.000000e+00 : f32
    %13 = vector.broadcast %cst_11 : f32 to vector<8x16xf32>
    %14 = arith.maximumf %12, %13 : vector<8x16xf32>
    %c0_12 = arith.constant 0 : index
    %c2 = arith.constant 2 : index
    %15 = vector.load %arg7[%c0_12, %c2] : memref<8x20xf32, #tpu.memory_space<vmem>>, vector<8x16xf32>
    tpu.vector_store %arg7[%c0_12, %c2], %14 {strides = array<i32>} : memref<8x20xf32, #tpu.memory_space<vmem>>, vector<8x16xf32>,
    %c0_13 = arith.constant 0 : index
    %c0_14 = arith.constant 0 : index
    %c0_15 = arith.constant 0 : index
    %16 = vector.load %arg4[%c0_13, %c0_14, %c0_15] : memref<5x8x8xf32, #tpu.memory_space<vmem>>, vector<1x8x8xf32>
    %17 = vector.shape_cast %16 : vector<1x8x8xf32> to vector<8x8xf32>
    %c0_16 = arith.constant 0 : index
    %c0_17 = arith.constant 0 : index
    %18 = vector.load %arg7[%c0_16, %c0_17] : memref<8x20xf32, #tpu.memory_space<vmem>>, vector<8x16xf32>
    %cst_18 = arith.constant dense<0.000000e+00> : vector<8x16xf32>
    %19 = tpu.matmul %17, %18, %cst_18 {dimension_numbers = #tpu.dot_dimension_numbers<[1], [0], [0], [1], [0, 0, 1, 1], [], []>} : vector<8x8xf32>, vector<8x16xf32>, vector<8x16xf32> -> vector<8x16xf32>
    %c1 = arith.constant 1 : index
    %c0_19 = arith.constant 0 : index
    %c0_20 = arith.constant 0 : index
    %20 = vector.load %arg4[%c1, %c0_19, %c0_20] : memref<5x8x8xf32, #tpu.memory_space<vmem>>, vector<1x8x8xf32>
    %21 = vector.shape_cast %20 : vector<1x8x8xf32> to vector<8x8xf32>
    %c0_21 = arith.constant 0 : index
    %c1_22 = arith.constant 1 : index
    %22 = vector.load %arg7[%c0_21, %c1_22] : memref<8x20xf32, #tpu.memory_space<vmem>>, vector<8x16xf32>
    %cst_23 = arith.constant dense<0.000000e+00> : vector<8x16xf32>
    %23 = tpu.matmul %21, %22, %cst_23 {dimension_numbers = #tpu.dot_dimension_numbers<[1], [0], [0], [1], [0, 0, 1, 1], [], []>} : vector<8x8xf32>, vector<8x16xf32>, vector<8x16xf32> -> vector<8x16xf32>
    %24 = arith.addf %19, %23 : vector<8x16xf32>
    %c2_24 = arith.constant 2 : index
    %c0_25 = arith.constant 0 : index
    %c0_26 = arith.constant 0 : index
    %25 = vector.load %arg4[%c2_24, %c0_25, %c0_26] : memref<5x8x8xf32, #tpu.memory_space<vmem>>, vector<1x8x8xf32>
    %26 = vector.shape_cast %25 : vector<1x8x8xf32> to vector<8x8xf32>
    %c0_27 = arith.constant 0 : index
    %c2_28 = arith.constant 2 : index
    %27 = vector.load %arg7[%c0_27, %c2_28] : memref<8x20xf32, #tpu.memory_space<vmem>>, vector<8x16xf32>
    %cst_29 = arith.constant dense<0.000000e+00> : vector<8x16xf32>
    %28 = tpu.matmul %26, %27, %cst_29 {dimension_numbers = #tpu.dot_dimension_numbers<[1], [0], [0], [1], [0, 0, 1, 1], [], []>} : vector<8x8xf32>, vector<8x16xf32>, vector<8x16xf32> -> vector<8x16xf32>
    %29 = arith.addf %24, %28 : vector<8x16xf32>
    %c3 = arith.constant 3 : index
    %c0_30 = arith.constant 0 : index
    %c0_31 = arith.constant 0 : index
    %30 = vector.load %arg4[%c3, %c0_30, %c0_31] : memref<5x8x8xf32, #tpu.memory_space<vmem>>, vector<1x8x8xf32>
    %31 = vector.shape_cast %30 : vector<1x8x8xf32> to vector<8x8xf32>
    %c0_32 = arith.constant 0 : index
    %c3_33 = arith.constant 3 : index
    %32 = vector.load %arg7[%c0_32, %c3_33] : memref<8x20xf32, #tpu.memory_space<vmem>>, vector<8x16xf32>
    %cst_34 = arith.constant dense<0.000000e+00> : vector<8x16xf32>
    %33 = tpu.matmul %31, %32, %cst_34 {dimension_numbers = #tpu.dot_dimension_numbers<[1], [0], [0], [1], [0, 0, 1, 1], [], []>} : vector<8x8xf32>, vector<8x16xf32>, vector<8x16xf32> -> vector<8x16xf32>
    %34 = arith.addf %29, %33 : vector<8x16xf32>
    %c4 = arith.constant 4 : index
    %c0_35 = arith.constant 0 : index
    %c0_36 = arith.constant 0 : index
    %35 = vector.load %arg4[%c4, %c0_35, %c0_36] : memref<5x8x8xf32, #tpu.memory_space<vmem>>, vector<1x8x8xf32>
    %36 = vector.shape_cast %35 : vector<1x8x8xf32> to vector<8x8xf32>
    %c0_37 = arith.constant 0 : index
    %c4_38 = arith.constant 4 : index
    %37 = vector.load %arg7[%c0_37, %c4_38] : memref<8x20xf32, #tpu.memory_space<vmem>>, vector<8x16xf32>
    %cst_39 = arith.constant dense<0.000000e+00> : vector<8x16xf32>
    %38 = tpu.matmul %36, %37, %cst_39 {dimension_numbers = #tpu.dot_dimension_numbers<[1], [0], [0], [1], [0, 0, 1, 1], [], []>} : vector<8x8xf32>, vector<8x16xf32>, vector<8x16xf32> -> vector<8x16xf32>
    %39 = arith.addf %34, %38 : vector<8x16xf32>
    %c0_40 = arith.constant 0 : index
    %c0_41 = arith.constant 0 : index
    %c0_42 = arith.constant 0 : index
    %40 = vector.load %arg5[%c0_40, %c0_41, %c0_42] : memref<1x8x16xf32, #tpu.memory_space<vmem>>, vector<1x8x16xf32>
    %41 = vector.shape_cast %40 : vector<1x8x16xf32> to vector<8x16xf32>
    %42 = vector.shape_cast %39 : vector<8x16xf32> to vector<1x8x16xf32>
    tpu.vector_store %arg5[%c0_40, %c0_41, %c0_42], %42 {strides = array<i32>} : memref<1x8x16xf32, #tpu.memory_space<vmem>>, vector<1x8x16xf32>,
    %cst_43 = arith.constant dense<0.000000e+00> : vector<8xf32>
    %43 = vector.multi_reduction <add>, %39, %cst_43 [1] : vector<8x16xf32> to vector<8xf32>
    %44 = vector.shape_cast %43 : vector<8xf32> to vector<8x1xf32>
    %45 = arith.addf %3, %44 : vector<8x1xf32>
    %46 = arith.mulf %39, %39 : vector<8x16xf32>
    %cst_44 = arith.constant dense<0.000000e+00> : vector<8xf32>
    %47 = vector.multi_reduction <add>, %46, %cst_44 [1] : vector<8x16xf32> to vector<8xf32>
    %48 = vector.shape_cast %47 : vector<8xf32> to vector<8x1xf32>
    %49 = arith.addf %4, %48 : vector<8x1xf32>
    %50 = tpu.concatenate %45, %49 in 0 : vector<8x1xf32>, vector<8x1xf32> -> vector<16x1xf32>
    %c0_45 = arith.constant 0 : index
    %c0_46 = arith.constant 0 : index
    %c0_47 = arith.constant 0 : index
    %51 = vector.load %arg6[%c0_45, %c0_46, %c0_47] : memref<1x16x1xf32, #tpu.memory_space<vmem>>, vector<1x16x1xf32>
    %52 = vector.shape_cast %51 : vector<1x16x1xf32> to vector<16x1xf32>
    %53 = vector.shape_cast %50 : vector<16x1xf32> to vector<1x16x1xf32>
    tpu.vector_store %arg6[%c0_45, %c0_46, %c0_47], %53 {strides = array<i32>} : memref<1x16x1xf32, #tpu.memory_space<vmem>>, vector<1x16x1xf32>,
    return
  }
  func.func @transform_0(%arg0: i32) -> (i32, i32, i32) {
    %c0_i32 = arith.constant 0 : i32
    %c0_i32_0 = arith.constant 0 : i32
    %c0_i32_1 = arith.constant 0 : i32
    return %arg0, %c0_i32, %c0_i32_0 : i32, i32, i32
  }
  func.func @transform_1(%arg0: i32) -> (i32, i32) {
    %c0_i32 = arith.constant 0 : i32
    %c0_i32_0 = arith.constant 0 : i32
    %c0_i32_1 = arith.constant 0 : i32
    return %c0_i32, %c0_i32_0 : i32, i32
  }
  func.func @transform_2(%arg0: i32) -> (i32, i32) {
    %c0_i32 = arith.constant 0 : i32
    %c0_i32_0 = arith.constant 0 : i32
    %c0_i32_1 = arith.constant 0 : i32
    return %c0_i32, %c0_i32_0 : i32, i32
  }
  func.func @transform_3(%arg0: i32) -> (i32, i32, i32) {
    %c0_i32 = arith.constant 0 : i32
    %c0_i32_0 = arith.constant 0 : i32
    %c0_i32_1 = arith.constant 0 : i32
    %c0_i32_2 = arith.constant 0 : i32
    return %c0_i32, %c0_i32_0, %c0_i32_1 : i32, i32, i32
  }
  func.func @transform_4(%arg0: i32) -> (i32, i32, i32) {
    %c0_i32 = arith.constant 0 : i32
    %c0_i32_0 = arith.constant 0 : i32
    %c0_i32_1 = arith.constant 0 : i32
    return %arg0, %c0_i32, %c0_i32_0 : i32, i32, i32
  }
  func.func @transform_5(%arg0: i32) -> (i32, i32, i32) {
    %c0_i32 = arith.constant 0 : i32
    %c0_i32_0 = arith.constant 0 : i32
    %c0_i32_1 = arith.constant 0 : i32
    return %arg0, %c0_i32, %c0_i32_0 : i32, i32, i32
  }
}

</mosaic_0001>

<bundles_post_ra>
// kernel: double_conv_pallas.3
= control target key start
LH: loop header
LB: loop body
LE: loop exit
PB: predicated region body
PF: predicated region fallthrough
CT: control target
= control target key end

     0   :  { %9 = vsyncpa [#allocation4], 0  ;;  %s1363_s0 = inlined_call_operand.hbm [shape: f32[2,4,16], index: 0, kind: input, shape index: {}]   ;;  %s1364_s1 = inlined_call_operand.hbm [shape: f32[5,8,4], index: 1, kind: input, shape index: {}]   ;;  %s1365_s2 = inlined_call_operand.hbm [shape: f32[2,8,16], index: 2, kind: output, shape index: {0}]   ;;  %s1366_s3 = inlined_call_operand.hbm [shape: f32[2,16,1], index: 3, kind: output, shape index: {1}]  }
   0x1   :  { %11 = vsyncpa [#allocation4 + $0x1], 0 }
   0x2   :  { %12 = vsyncpa [#allocation7], 0 }
   0x3   :  { %13 = vsyncpa [#allocation5], 0 }
   0x4   :  { %15 = vsyncpa [#allocation5 + $0x1], 0 }
   0x5   :  { %16 = vsyncpa [#allocation10], 0 }
   0x6   :  { %18 = vsyncpa [#allocation10 + $0x1], 0  ;;  %s1124_s12 = smov 0   ;;  %s1126_s13 = smov 0  }
   0x7   :  { %s1128_s14 = smov 0   ;;  %s1130_s15 = smov 0  }
   0x8 LB: > { %s1145_s16 = sadd.s32 4294967295, %s1087_s15   ;;  %s783_s17 = sadd.s32 4294967294, %s1087_s15   ;;  %s1087_s15 = sphi %s1130_s15, %s1386_s15   ;;  %s1083_s14 = sphi %s1128_s14, %s1385_s14   ;;  %s1079_s13 = sphi %s1126_s13, %s1384_s13   ;;  %s1075_s12 = sphi %s1124_s12, %s1383_s12  }
   0x9   : > { %p44_p0 = scmp.ne.s32.totalorder %s1079_s13, %s1075_s12  ;;  %p1367_p1 = scmp.eq.s32.totalorder %s1145_s16, 0 }
   0xa   : > { %p95_p3 = scmp.eq.s32.totalorder %s783_s17, 1  ;;  %p784_p5 = scmp.ge.s32.totalorder %s1087_s15, 1 }
   0xb   : > { %p1154_p4 = por %p1367_p1, %p44_p0  ;;  %p128_p7 = scmp.lt.s32.totalorder %s1087_s15, 3 }
   0xc   : > { %p1159_p6 = por %p95_p3, %p44_p0  ;;  %s1089_s21 = smov [#allocation6]  }
   0xd   : > { %s1370_s18 = scalar_select %p1154_p4, 1, 0 }
   0xe   : > { %s1371_s19 = scalar_select %p1159_p6, 1, 0 }
   0xf   : > { %p1164_p8 = pnand %p784_p5, %p128_p7  ;;  %s140_s22 = sshll.u32 %s1089_s21, 4  ;;  %s1168_s22 = int_to_ptr.vmem [resolvable:$true] %s140_s22 }
  0x10   : > { %s1180_s24 = sadd.s32 1, %s1087_s15   ;;  %s31_s25 = sadd.s32 1, %s1083_s14 }
  0x11   : > { %s1372_s20 = scalar_select %p1164_p8, 1, 0 }
  0x12   : > { %p864_p9 = pneg %p1164_p8  ;;  %s28_s26 = ssub.s32 %s1087_s15, %s1180_s24 }
  0x13   : > { %s927_s29 = scalar_lea.hbm %s1364_s1, 640 }
  0x14   : > { %p1175_p11 = pnand %p864_p9, %p1367_p1  ;;  %p928_p12 = scmp.ne.s32.totalorder %s1364_s1, %s927_s29 }
  0x15   : > { %p934_p5 = scmp.lt.u32.totalorder %s927_s29, %s1364_s1 }
  0x16   : > { %p929_p13 = pneg %p1175_p11 }
  0x18   : > { %p930_p0 = pnand %p929_p13, %p928_p12 }
  0x1a   : > { %p931_p3 = pneg %p930_p0 }
  0x1c   : > { %p936_p7 = pnand %p934_p5, %p931_p3 }
  0x1e   : > { %939 = shalt.err (!%p936_p7)
}
  0x1f   : > { %s940_s7 = scalar_lea.vmem %s1168_s22, 640  ;;  %p948_p2 = scmp.lt.s32.totalorder %s1168_s22, %s1168_s22 }
  0x20   : > { %p941_p9 = scmp.ne.s32.totalorder %s1168_s22, %s940_s7  ;;  %p949_p6 = scmp.lt.s32.totalorder %s940_s7, %s940_s7 }
  0x22   : > { %p943_p10 = pnand %p941_p9, %p929_p13  ;;  %p950_p4 = por %p949_p6, %p948_p2 }
  0x24   : > { %p944_p1 = pneg %p943_p10 }
  0x26   : > { %p951_p8 = pnand %p950_p4, %p944_p1 }
  0x28   : > { %954 = shalt.err (!%p951_p8)
}
  0x29   : > { %s1090_s8 = smov 128   ;;  %s1091_s9 = smov 8  }
  0x2a   : > { %867 = dma.hbm_to_vmem [thread:$0]  (!%p1175_p11), %s1364_s1, 640, %s1168_s22, [#allocation7], %s1090_s8, %s1090_s8, %s1091_s9  }
  0x2b   : > { %p29_p2 = scmp.eq.s32.totalorder %s28_s26, 0  ;;  %p38_p1 = scmp.ne.s32.totalorder %s1083_s14, %s1079_s13 }
  0x2c   : > { %p39_p4 = scmp.eq.s32.totalorder %s1087_s15, 0  ;;  %p880_p6 = scmp.lt.s32.totalorder %s1087_s15, 2 }
  0x2d   : > { %s1211_s17 = scalar_select %p29_p2, %s1083_s14, %s31_s25  }
  0x2e   : > { %p40_p8 = por %p39_p4, %p38_p1  ;;  %p1374_p10 = scmp.eq.s32.totalorder %s1145_s16, 1 }
  0x2f   : > { %s154_s27 = sand.u32 1, %s1083_s14   ;;  %s788_s28 = sshll.u32 %s1087_s15, 6 }
  0x30   : > { %p1215_p12 = por %p1374_p10, %p38_p1  ;;  %s787_s29 = sshll.u32 %s154_s27, 2 }
  0x31   : > { %s1224_s4 = scalar_lea.hbm %s1363_s0, %s788_s28  ;;  %s158_s22 = scalar_lea.vmem [#allocation3], %s787_s29 }
  0x32   : > { %s165_s25 = sshll.u32 %s158_s22, 4  ;;  %p1226_p11 = pnand %p880_p6, %p40_p8  ;;  %s1230_s25 = int_to_ptr.vmem [resolvable:$true] %s165_s25 }
  0x33   : > { %s155_s5 = scalar_lea.sflag [#allocation4], %s154_s27  ;;  %s955_s6 = scalar_lea.hbm %s1224_s4, 64 }
  0x34   : > { %p956_p13 = scmp.ne.s32.totalorder %s1224_s4, %s955_s6  ;;  %p957_p0 = pneg %p1226_p11 }
  0x35   : > { %s960_s9 = scalar_lea.hbm %s1363_s0, 128  ;;  %p961_p7 = scmp.lt.u32.totalorder %s1224_s4, %s1363_s0 }
  0x36   : > { %p958_p3 = pnand %p957_p0, %p956_p13  ;;  %p962_p9 = scmp.lt.u32.totalorder %s960_s9, %s955_s6 }
  0x37   : > { %p964_p1 = scmp.lt.u32.totalorder %s955_s6, %s1224_s4 }
  0x38   : > { %p959_p5 = pneg %p958_p3  ;;  %p963_p2 = por %p962_p9, %p961_p7 }
  0x3a   : > { %p965_p4 = por %p964_p1, %p963_p2 }
  0x3c   : > { %p966_p6 = pnand %p965_p4, %p959_p5 }
  0x3e   : > { %969 = shalt.err (!%p966_p6)
}
  0x3f   : > { %s970_s27 = scalar_lea.vmem %s1230_s25, 64  ;;  %s1092_s28 = smov [#allocation3]  }
  0x40   : > { %p971_p8 = scmp.ne.s32.totalorder %s1230_s25, %s970_s27  ;;  %s975_s29 = sshll.u32 %s1092_s28, 4  ;;  %s976_s29 = int_to_ptr.vmem [resolvable:$false] %s975_s29 }
  0x41   : > { %s977_s23 = scalar_lea.vmem %s976_s29, 128  ;;  %p978_p3 = scmp.lt.s32.totalorder %s1230_s25, %s976_s29 }
  0x42   : > { %p973_p10 = pnand %p971_p8, %p957_p0  ;;  %p979_p7 = scmp.lt.s32.totalorder %s977_s23, %s970_s27 }
  0x44   : > { %p974_p13 = pneg %p973_p10  ;;  %p980_p9 = por %p979_p7, %p978_p3 }
  0x46   : > { %p981_p2 = pnand %p980_p9, %p974_p13 }
  0x48   : > { %984 = shalt.err (!%p981_p2)
}
  0x49   : > { %871 = dma.hbm_to_vmem [thread:$0]  (!%p1226_p11), %s1224_s4, 64, %s1230_s25, %s155_s5  }
  0x4a   : > { %p1377_p5 = scmp.ne.s32.totalorder %s1372_s20, 0 }
  0x4b   : > { %s1260_s30 = sand.u32 (!%p1377_p5), 1, %s1079_s13   ;;  %p1378_p0 = scmp.ne.s32.totalorder (!%p1377_p5), %s1370_s18, 0 }
  0x4c   : > { %174 = sbr.rel (%p1377_p5) target bundleno = 718 (0x2ce), region = 28  ;;  %s790_s22 = sshll.u32 (!%p1377_p5), %s1260_s30, 2 }
  0x4d   : > { %s177_s6 = scalar_lea.sflag (!%p1377_p5), [#allocation4], %s1260_s30  ;;  %s180_s7 = scalar_lea.vmem (!%p1377_p5), [#allocation3], %s790_s22 }
  0x53   : > { %1058 = dma.done.wait (%p1378_p0), %s177_s6, 64  }
  0x54   : > { %1060 = vsyncadd (%p1378_p0), %s177_s6, 4294967232  ;;  %p1379_p1 = scmp.eq.s32.totalorder %s1145_s16, 0 }
  0x56   : > { %1062 = dma.done.wait (%p1379_p1), [#allocation7], 640   ;;  %p1380_p11 = pmov %p1379_p1 }
  0x57   : > { %vm212_vm0 = vcmask 11264   ;;  %vm214_vm1 = vcmask 158864   ;;  %v1093_v0 = vmov 0.0   ;;  %v216_v1 = vld [vmem:[%s180_s7] sm:$0xf]  ;;  %s1094_s20 = smov 2  }
  0x58   : > { %1064 = vsyncadd (%p1380_p11), [#allocation7], 4294966656  ;;  %213 = vst.msk [vmem:[#allocation2] sm:$0xf] %vm212_vm0, %v1093_v0  ;;  %822 = vmatprep.subr.mxu1 %v1093_v0  ;;  %832 = vmatprep.subr.mxu0 %v1093_v0  ;;  %vm1095_vm2 = vmmov 0   ;;  %vm221_vm3 = vcmask 142352  }
  0x59   : > { %215 = vst.msk [vmem:[#allocation2] sm:$0xf] %vm214_vm1, %v1093_v0  ;;  %218 = vrot.lane.b32.xlu0 %v216_v1, %s1094_s20  ;;  %834 = vmatprep.mubr.msk.f32.mxu0 %vm1095_vm2, %v1093_v0  ;;  %s1096_s18 = smov 127   ;;  %s1097_s4 = smov 126   ;;  %vm234_vm4 = vcmask 1043456   ;;  %vm230_vm5 = vcmask 31744  }
  0x5a   : > { %824 = vmatprep.mubr.msk.f32.mxu1 %vm1095_vm2, %v1093_v0  ;;  %s1098_s25 = smov 125   ;;  %s1099_s26 = smov 124   ;;  %v383_v4 = vld [vmem:[#allocation6 + $0x10] sm:$0xff]  ;;  %v226_v7 = vld [vmem:[#allocation6 + $0x8] sm:$0xff]  ;;  %v463_v9 = vld [vmem:[#allocation6 + $0x18] sm:$0xff]  ;;  %vm622_vm6 = vcmask 130048  }
  0x5b   : > { %v223_v10 = vld [vmem:[#allocation6] sm:$0xff]  ;;  %s792_s5 = sshll.u32 %s1260_s30, 3  ;;  %s806_s9 = sshll.u32 %s1145_s16, 7 }
  0x5c   : > { %v543_v12 = vld [vmem:[#allocation6 + $0x20] sm:$0xff]  ;;  %s204_s8 = scalar_lea.vmem [#allocation8], %s792_s5  ;;  %s1292_s27 = scalar_lea.hbm %s1365_s2, %s806_s9 }
  0x5d   : > { %s655_s28 = sshll.u32 %s204_s8, 4  ;;  %s637_s29 = scalar_lea.sflag [#allocation5], %s1260_s30  ;;  %s656_s28 = int_to_ptr.vmem [resolvable:$true] %s655_s28 }
  0x5e   : > { %s985_s23 = scalar_lea.vmem %s656_s28, 128  ;;  %s1100_s22 = smov [#allocation8]  }
  0x5f   : > { %p986_p4 = scmp.ne.s32.totalorder %s656_s28, %s985_s23  ;;  %s989_s6 = sshll.u32 %s1100_s22, 4  ;;  %s990_s6 = int_to_ptr.vmem [resolvable:$false] %s989_s6 }
  0x60   : > { %s991_s7 = scalar_lea.vmem %s990_s6, 256  ;;  %p992_p10 = scmp.lt.s32.totalorder %s656_s28, %s990_s6 }
  0x61   : > { %p987_p6 = pnand %p986_p4, %p1215_p12  ;;  %p993_p13 = scmp.lt.s32.totalorder %s991_s7, %s985_s23 }
  0x63   : > { %p988_p8 = pneg %p987_p6  ;;  %p994_p3 = por %p993_p13, %p992_p10 }
  0x65   : > { %p995_p7 = pnand %p994_p3, %p988_p8 }
  0xcb   : > { %v219_v2 = vpop.permute.xlu0 %218 }
  0xcc   : > { %222 = vst.msk [vmem:[#allocation2] sm:$0xf] %vm221_vm3, %v219_v2 }
  0xd3   : > { %v224_v3 = vld [vmem:[#allocation2] sm:$0xf] }
  0xd4   : > { %228 = vrot.lane.b32.xlu1 %v224_v3, %s1096_s18  ;;  %384 = vrot.lane.b32.xlu0 %v224_v3, %s1097_s4 }
  0xd8   : > { %464 = vrot.lane.b32.xlu1 %v224_v3, %s1098_s25  ;;  %544 = vrot.lane.b32.xlu0 %v224_v3, %s1099_s26 }
 0x146   : > { %v229_v5 = vpop.permute.xlu1 %228  ;;  %v385_v6 = vpop.permute.xlu0 %384 }
 0x147   : > { %823 = vmatpush3.msk.msra.mxu1 %vm234_vm4, %v229_v5  ;;  %833 = vmatpush3.msk.msra.mxu0 %vm234_vm4, %v385_v6 }
 0x148   : > { %827 = vmatprep.subr.mxu1 %v1093_v0  ;;  %835 = vmatmul.mubr.msk.f32.vlgmr.msra.gmra.mrb[0].mxu0 %vm230_vm5, %v383_v4 }
 0x149   : > { %825 = vmatmul.mubr.msk.f32.vlgmr.msra.gmra.mrb[0].mxu1 %vm230_vm5, %v226_v7  ;;  %837 = vmatprep.subr.mxu0 %v1093_v0 }
 0x14a   : > { %828 = vmatpush3.msk.msra.mxu1 %vm234_vm4, %v224_v3  ;;  %v465_v8 = vpop.permute.xlu1 %464  ;;  %839 = vmatprep.mubr.msk.f32.mxu0 %vm1095_vm2, %v1093_v0  ;;  %v545_v11 = vpop.permute.xlu0 %544 }
 0x14b   : > { %838 = vmatpush3.msk.msra.mxu0 %vm234_vm4, %v465_v8  ;;  %829 = vmatprep.mubr.msk.f32.mxu1 %vm1095_vm2, %v1093_v0 }
 0x14c   : > { %842 = vmatprep.subr.mxu0 %v1093_v0 }
 0x150   : > { %840 = vmatmul.mubr.msk.f32.vlgmr.msra.gmra.mrb[0].mxu0 %vm230_vm5, %v463_v9 }
 0x151   : > { %843 = vmatpush3.msk.msra.mxu0 %vm234_vm4, %v545_v11  ;;  %830 = vmatmul.mubr.msk.f32.vlgmr.msra.gmra.mrb[0].mxu1 %vm230_vm5, %v223_v10 }
 0x152   : > { %844 = vmatprep.mubr.msk.f32.mxu0 %vm1095_vm2, %v1093_v0 }
 0x158   : > { %845 = vmatmul.mubr.msk.f32.vlgmr.msra.gmra.mrb[0].mxu0 %vm230_vm5, %v543_v12 }
 0x224   : > { %v378_v13 = vpop.f32.mrb[0].mxu1 }
 0x225   : > { %v831_v14 = vpop.f32.mrb[1].mxu1 }
 0x22b   : > { %v617_v15 = vpop.f32.mrb[0].mxu0 }
 0x22c   : > { %v847_v16 = vadd.f32 %v617_v15, %v378_v13  ;;  %v846_v17 = vpop.f32.mrb[1].mxu0 }
 0x22e   : > { %v624_v18 = vsel %vm622_vm6, %v847_v16, 0.0  ;;  %v628_v19 = vmul.f32 %v847_v16, %v847_v16  ;;  %623 = vst.msk [vmem:[%s204_s8] sm:$0xff] %vm622_vm6, %v847_v16 }
 0x22f   : > { %625 = vadd.xlane.f32.xlu1 %v624_v18 }
 0x230   : > { %v629_v20 = vsel %vm622_vm6, %v628_v19, 0.0 }
 0x231   : > { %630 = vadd.xlane.f32.xlu0 %v629_v20 }
 0x232   : > { %998 = shalt.err (!%p995_p7)
}
 0x233   : > { %s999_s20 = scalar_lea.hbm %s1292_s27, 128  ;;  %s1003_s25 = scalar_lea.hbm %s1365_s2, 256 }
 0x234   : > { %p1000_p9 = scmp.ne.s32.totalorder %s1292_s27, %s999_s20  ;;  %p1004_p0 = scmp.lt.u32.totalorder %s1292_s27, %s1365_s2 }
 0x235   : > { %p1005_p1 = scmp.lt.u32.totalorder %s1003_s25, %s999_s20  ;;  %p1007_p4 = scmp.lt.u32.totalorder %s999_s20, %s1292_s27 }
 0x236   : > { %p1001_p2 = pnand %p1000_p9, %p1215_p12 }
 0x237   : > { %p1006_p11 = por %p1005_p1, %p1004_p0 }
 0x238   : > { %p1002_p5 = pneg %p1001_p2 }
 0x239   : > { %p1008_p6 = por %p1007_p4, %p1006_p11 }
 0x23b   : > { %p1009_p8 = pnand %p1008_p6, %p1002_p5 }
 0x23d   : > { %1012 = shalt.err (!%p1009_p8)
}
 0x23e   : > { %860 = dma.vmem_to_hbm [thread:$0]  (%p1215_p12), %s656_s28, 128, %s1292_s27, %s637_s29   ;;  %vm633_vm7 = vcmask 7168  }
 0x23f   : > { %s793_s8 = sshll.u32 %s1260_s30, 4  ;;  %s811_s11 = sshll.u32 %s1145_s16, 8 }
 0x240   : > { %s211_s9 = scalar_lea.vmem [#allocation9], %s793_s8  ;;  %s1319_s6 = scalar_lea.hbm %s1366_s3, %s811_s11 }
 0x241   : > { %s668_s10 = sshll.u32 %s211_s9, 4  ;;  %s642_s27 = scalar_lea.sflag [#allocation10], %s1260_s30  ;;  %s1314_s10 = int_to_ptr.vmem [resolvable:$true] %s668_s10 }
 0x242   : > { %s1013_s28 = scalar_lea.vmem %s1314_s10, 256  ;;  %s1101_s16 = smov [#allocation9]  }
 0x243   : > { %p1014_p10 = scmp.ne.s32.totalorder %s1314_s10, %s1013_s28  ;;  %s1017_s29 = sshll.u32 %s1101_s16, 4  ;;  %s1018_s29 = int_to_ptr.vmem [resolvable:$false] %s1017_s29 }
 0x244   : > { %s1019_s7 = scalar_lea.vmem %s1018_s29, 512  ;;  %p1020_p7 = scmp.lt.s32.totalorder %s1314_s10, %s1018_s29 }
 0x245   : > { %p1015_p13 = pnand %p1014_p10, %p1215_p12  ;;  %p1021_p9 = scmp.lt.s32.totalorder %s1019_s7, %s1013_s28 }
 0x247   : > { %p1016_p3 = pneg %p1015_p13  ;;  %p1022_p2 = por %p1021_p9, %p1020_p7 }
 0x249   : > { %p1023_p5 = pnand %p1022_p2, %p1016_p3 }
 0x2bc   : > { %v626_v21 = vpop.xlane.xlu1 %625 }
 0x2bd   : > { %634 = vst.msk [vmem:[%s211_s9] sm:$0xff] %vm633_vm7, %v626_v21 }
 0x2be   : > { %v631_v22 = vpop.xlane.xlu0 %630 }
 0x2bf   : > { %635 = vst.msk [vmem:[%s211_s9 + $0x8] sm:$0xff] %vm633_vm7, %v631_v22 }
 0x2c0   : > { %1026 = shalt.err (!%p1023_p5)
}
 0x2c1   : > { %s1027_s20 = scalar_lea.hbm %s1319_s6, 256  ;;  %s1031_s25 = scalar_lea.hbm %s1366_s3, 512 }
 0x2c2   : > { %p1028_p0 = scmp.ne.s32.totalorder %s1319_s6, %s1027_s20  ;;  %p1032_p4 = scmp.lt.u32.totalorder %s1319_s6, %s1366_s3 }
 0x2c3   : > { %p1033_p6 = scmp.lt.u32.totalorder %s1031_s25, %s1027_s20  ;;  %p1035_p10 = scmp.lt.u32.totalorder %s1027_s20, %s1319_s6 }
 0x2c4   : > { %p1029_p1 = pnand %p1028_p0, %p1215_p12 }
 0x2c5   : > { %p1034_p8 = por %p1033_p6, %p1032_p4 }
 0x2c6   : > { %p1030_p11 = pneg %p1029_p1 }
 0x2c7   : > { %p1036_p13 = por %p1035_p10, %p1034_p8 }
 0x2c9   : > { %p1037_p3 = pnand %p1036_p13, %p1030_p11 }
 0x2cb   : > { %1040 = shalt.err (!%p1037_p3)
}
 0x2cc   : > { %s1102_s8 = smov 128   ;;  %s1103_s9 = smov 8  }
 0x2cd   : > { %861 = dma.vmem_to_hbm [thread:$0]  (%p1215_p12), %s1314_s10, 256, %s1319_s6, %s642_s27, %s1102_s8, %s1102_s8, %s1103_s9  }
 0x2ce PF: > { %s683_s11 = sand.u32 1, %s1075_s12   ;;  %p1381_p7 = scmp.ne.s32.totalorder %s1371_s19, 0 }
 0x2cf   : > { %p1382_p9 = scmp.ge.s32.totalorder %s1087_s15, 2  ;;  %s684_s23 = scalar_lea.sflag [#allocation5], %s683_s11 }
 0x2d1   : > { %p873_p2 = pnand %p1382_p9, %p1381_p7 }
 0x2d3   : > { %1066 = dma.done.wait (!%p873_p2), %s684_s23, 128  }
 0x2d4   : > { %1068 = vsyncadd (!%p873_p2), %s684_s23, 4294967168  ;;  %s693_s22 = scalar_lea.sflag [#allocation10], %s683_s11 }
 0x2d5   : > { %1070 = dma.done.wait (!%p873_p2), %s693_s22, 256  }
 0x2d6   : > { %1072 = vsyncadd (!%p873_p2), %s693_s22, 4294967040  ;;  %p21_p12 = scmp.ge.s32.totalorder %s1180_s24, 4   ;;  %s1383_s12 = smov %s1079_s13 }
 0x2d7   : > { %s1384_s13 = smov %s1083_s14  ;;  %s1385_s14 = smov %s1211_s17 }
 0x2d8   : > { %s1386_s15 = smov %s1180_s24  ;;  %23 = sbr.rel (!%p21_p12) target bundleno = 8 (0x8), region = 98 }
 0x2df   :  { %698 = vsyncpa [#allocation4], 1 }
 0x2e0   :  { %700 = vsyncpa [#allocation4 + $0x1], 1 }
 0x2e1   :  { %701 = vsyncpa [#allocation7], 1 }
 0x2e2   :  { %702 = vsyncpa [#allocation5], 1 }
 0x2e3   :  { %704 = vsyncpa [#allocation5 + $0x1], 1 }
 0x2e4   :  { %705 = vsyncpa [#allocation10], 1 }
 0x2e5   :  { %707 = vsyncpa [#allocation10 + $0x1], 1 }

// kernel: double_conv_pallas.5
= control target key start
LH: loop header
LB: loop body
LE: loop exit
PB: predicated region body
PF: predicated region fallthrough
CT: control target
= control target key end

     0   :  { %8 = vsyncpa [#allocation3], 0  ;;  %s825_s0 = inlined_call_operand.hbm [shape: f32[2,8,16], index: 0, kind: input, shape index: {}, may-alias: {0,3}]   ;;  %s826_s1 = inlined_call_operand.hbm [shape: f32[8,1], index: 1, kind: input, shape index: {}]   ;;  %s827_s2 = inlined_call_operand.hbm [shape: f32[8,1], index: 2, kind: input, shape index: {}]   ;;  %s828_s3 = inlined_call_operand.hbm [shape: f32[2,8,16], index: 3, kind: output, shape index: {}, may-alias: {0,3}]  }
   0x1   :  { %10 = vsyncpa [#allocation3 + $0x1], 0 }
   0x2   :  { %11 = vsyncpa [#allocation6], 0 }
   0x3   :  { %12 = vsyncpa [#allocation4], 0 }
   0x4   :  { %14 = vsyncpa [#allocation4 + $0x1], 0  ;;  %s600_s12 = smov 0   ;;  %s602_s13 = smov 0  }
   0x5   :  { %s604_s14 = smov 0   ;;  %s606_s15 = smov 0  }
   0x6 LB: > { %s621_s16 = sadd.s32 4294967295, %s573_s15   ;;  %s332_s17 = sadd.s32 4294967294, %s573_s15   ;;  %s573_s15 = sphi %s606_s15, %s848_s15   ;;  %s569_s14 = sphi %s604_s14, %s847_s14   ;;  %s565_s13 = sphi %s602_s13, %s846_s13   ;;  %s561_s12 = sphi %s600_s12, %s845_s12  }
   0x7   : > { %p40_p0 = scmp.ne.s32.totalorder %s565_s13, %s561_s12  ;;  %p829_p1 = scmp.eq.s32.totalorder %s621_s16, 0 }
   0x8   : > { %p112_p3 = scmp.eq.s32.totalorder %s332_s17, 1  ;;  %p333_p5 = scmp.ge.s32.totalorder %s573_s15, 1 }
   0x9   : > { %p630_p4 = por %p829_p1, %p40_p0  ;;  %p119_p7 = scmp.lt.s32.totalorder %s573_s15, 3 }
   0xa   : > { %p635_p6 = por %p112_p3, %p40_p0  ;;  %s575_s21 = smov [#allocation5]  }
   0xb   : > { %s832_s18 = scalar_select %p630_p4, 1, 0 }
   0xc   : > { %s833_s19 = scalar_select %p635_p6, 1, 0 }
   0xd   : > { %p640_p8 = pnand %p333_p5, %p119_p7  ;;  %s132_s22 = sshll.u32 %s575_s21, 4  ;;  %s133_s22 = int_to_ptr.vmem [resolvable:$true] %s132_s22 }
   0xe   : > { %s576_s23 = smov [#allocation7]   ;;  %s656_s26 = sadd.s32 1, %s573_s15  }
   0xf   : > { %s834_s20 = scalar_select %p640_p8, 1, 0 }
  0x10   : > { %p360_p10 = pneg %p640_p8  ;;  %s143_s24 = sshll.u32 %s576_s23, 4  ;;  %s653_s24 = int_to_ptr.vmem [resolvable:$true] %s143_s24 }
  0x11   : > { %s24_s27 = ssub.s32 %s573_s15, %s656_s26  ;;  %s417_s30 = scalar_lea.hbm %s826_s1, 128 }
  0x12   : > { %p649_p11 = pnand %p360_p10, %p829_p1  ;;  %p418_p12 = scmp.ne.s32.totalorder %s826_s1, %s417_s30 }
  0x13   : > { %p424_p5 = scmp.lt.u32.totalorder %s417_s30, %s826_s1 }
  0x14   : > { %p419_p13 = pneg %p649_p11 }
  0x16   : > { %p420_p0 = pnand %p419_p13, %p418_p12 }
  0x18   : > { %p421_p3 = pneg %p420_p0 }
  0x1a   : > { %p426_p7 = pnand %p424_p5, %p421_p3 }
  0x1c   : > { %429 = shalt.err (!%p426_p7)
}
  0x1d   : > { %s430_s8 = scalar_lea.vmem %s133_s22, 128  ;;  %p438_p2 = scmp.lt.s32.totalorder %s133_s22, %s133_s22 }
  0x1e   : > { %p431_p10 = scmp.ne.s32.totalorder %s133_s22, %s430_s8  ;;  %p439_p6 = scmp.lt.s32.totalorder %s430_s8, %s430_s8 }
  0x20   : > { %p433_p9 = pnand %p431_p10, %p419_p13  ;;  %p440_p4 = por %p439_p6, %p438_p2 }
  0x22   : > { %p434_p1 = pneg %p433_p9 }
  0x24   : > { %p441_p8 = pnand %p440_p4, %p434_p1 }
  0x26   : > { %444 = shalt.err (!%p441_p8)
}
  0x27   : > { %363 = dma.hbm_to_vmem [thread:$0]  (!%p649_p11), %s826_s1, 128, %s133_s22, [#allocation6]  }
  0x28   : > { %s445_s21 = scalar_lea.hbm %s827_s2, 128 }
  0x29   : > { %p446_p9 = scmp.ne.s32.totalorder %s827_s2, %s445_s21  ;;  %p452_p4 = scmp.lt.u32.totalorder %s445_s21, %s827_s2 }
  0x2b   : > { %p448_p2 = pnand %p446_p9, %p419_p13 }
  0x2d   : > { %p449_p1 = pneg %p448_p2 }
  0x2f   : > { %p454_p6 = pnand %p452_p4, %p449_p1 }
  0x31   : > { %457 = shalt.err (!%p454_p6)
}
  0x32   : > { %s458_s22 = scalar_lea.vmem %s653_s24, 128  ;;  %p466_p3 = scmp.lt.s32.totalorder %s653_s24, %s653_s24 }
  0x33   : > { %p459_p8 = scmp.ne.s32.totalorder %s653_s24, %s458_s22  ;;  %p467_p5 = scmp.lt.s32.totalorder %s458_s22, %s458_s22 }
  0x35   : > { %p461_p12 = pnand %p459_p8, %p419_p13  ;;  %p468_p7 = por %p467_p5, %p466_p3 }
  0x37   : > { %p462_p0 = pneg %p461_p12 }
  0x39   : > { %p469_p10 = pnand %p468_p7, %p462_p0 }
  0x3b   : > { %472 = shalt.err (!%p469_p10)
}
  0x3c   : > { %366 = dma.hbm_to_vmem [thread:$0]  (!%p649_p11), %s827_s2, 128, %s653_s24, [#allocation6]  }
  0x3d   : > { %p25_p13 = scmp.eq.s32.totalorder %s24_s27, 0  ;;  %s27_s6 = sadd.s32 1, %s569_s14 }
  0x3e   : > { %p34_p9 = scmp.ne.s32.totalorder %s569_s14, %s565_s13  ;;  %p35_p2 = scmp.eq.s32.totalorder %s573_s15, 0 }
  0x3f   : > { %s715_s25 = scalar_select %p25_p13, %s569_s14, %s27_s6  }
  0x40   : > { %p36_p1 = por %p35_p2, %p34_p9  ;;  %p836_p4 = scmp.eq.s32.totalorder %s621_s16, 1 }
  0x41   : > { %p377_p8 = scmp.lt.s32.totalorder %s573_s15, 2  ;;  %s154_s8 = sand.u32 1, %s569_s14  }
  0x42   : > { %p719_p6 = por %p836_p4, %p34_p9  ;;  %s337_s9 = sshll.u32 %s154_s8, 3 }
  0x43   : > { %s338_s10 = sshll.u32 %s573_s15, 7  ;;  %s158_s27 = scalar_lea.vmem [#allocation2], %s337_s9 }
  0x44   : > { %s729_s24 = scalar_lea.hbm %s825_s0, %s338_s10  ;;  %s165_s21 = sshll.u32 %s158_s27, 4  ;;  %s731_s21 = int_to_ptr.vmem [resolvable:$true] %s165_s21 }
  0x45   : > { %p733_p11 = pnand %p377_p8, %p36_p1  ;;  %s155_s28 = scalar_lea.sflag [#allocation3], %s154_s8 }
  0x46   : > { %s473_s29 = scalar_lea.hbm %s729_s24, 128  ;;  %s478_s4 = scalar_lea.hbm %s825_s0, 256 }
  0x47   : > { %p474_p12 = scmp.ne.s32.totalorder %s729_s24, %s473_s29  ;;  %p475_p0 = pneg %p733_p11 }
  0x48   : > { %p479_p7 = scmp.lt.u32.totalorder %s729_s24, %s825_s0  ;;  %p480_p10 = scmp.lt.u32.totalorder %s478_s4, %s473_s29 }
  0x49   : > { %p476_p3 = pnand %p475_p0, %p474_p12  ;;  %p482_p9 = scmp.lt.u32.totalorder %s473_s29, %s729_s24 }
  0x4a   : > { %p481_p13 = por %p480_p10, %p479_p7 }
  0x4b   : > { %p477_p5 = pneg %p476_p3 }
  0x4c   : > { %p483_p2 = por %p482_p9, %p481_p13 }
  0x4e   : > { %p484_p1 = pnand %p483_p2, %p477_p5 }
  0x50   : > { %487 = shalt.err (!%p484_p1)
}
  0x51   : > { %s488_s8 = scalar_lea.vmem %s731_s21, 128  ;;  %s577_s9 = smov [#allocation2]  }
  0x52   : > { %p489_p4 = scmp.ne.s32.totalorder %s731_s21, %s488_s8  ;;  %s493_s10 = sshll.u32 %s577_s9, 4  ;;  %s494_s10 = int_to_ptr.vmem [resolvable:$false] %s493_s10 }
  0x53   : > { %s495_s11 = scalar_lea.vmem %s494_s10, 256  ;;  %p496_p3 = scmp.lt.s32.totalorder %s731_s21, %s494_s10 }
  0x54   : > { %p491_p8 = pnand %p489_p4, %p475_p0  ;;  %p497_p7 = scmp.lt.s32.totalorder %s495_s11, %s488_s8 }
  0x56   : > { %p492_p12 = pneg %p491_p8  ;;  %p498_p10 = por %p497_p7, %p496_p3 }
  0x58   : > { %p499_p13 = pnand %p498_p10, %p492_p12 }
  0x5a   : > { %502 = shalt.err (!%p499_p13)
}
  0x5b   : > { %370 = dma.hbm_to_vmem [thread:$0]  (!%p733_p11), %s729_s24, 128, %s731_s21, %s155_s28  }
  0x5c   : > { %p839_p5 = scmp.ne.s32.totalorder %s834_s20, 0 }
  0x5d   : > { %s765_s17 = sand.u32 (!%p839_p5), 1, %s565_s13   ;;  %p840_p0 = scmp.ne.s32.totalorder (!%p839_p5), %s832_s18, 0 }
  0x5e   : > { %174 = sbr.rel (%p839_p5) target bundleno = 257 (0x101), region = 32  ;;  %s340_s27 = sshll.u32 (!%p839_p5), %s765_s17, 3 }
  0x5f   : > { %s177_s29 = scalar_lea.sflag (!%p839_p5), [#allocation3], %s765_s17  ;;  %s180_s30 = scalar_lea.vmem (!%p839_p5), [#allocation2], %s340_s27 }
  0x65   : > { %548 = dma.done.wait (%p840_p0), %s177_s29, 128  }
  0x66   : > { %550 = vsyncadd (%p840_p0), %s177_s29, 4294967168  ;;  %p841_p9 = scmp.eq.s32.totalorder %s621_s16, 0 }
  0x68   : > { %552 = dma.done.wait (%p841_p9), [#allocation6], 256   ;;  %p842_p11 = pmov %p841_p9 }
  0x69   : > { %v578_v0 = vmov 0   ;;  %v212_v1 = vld [vmem:[#allocation5] sm:$0xff]  ;;  %v219_v2 = vld [vmem:[#allocation7] sm:$0xff]  ;;  %v211_v4 = vld [vmem:[%s180_s30] sm:$0xff]  ;;  %s345_s18 = sshll.u32 %s621_s16, 7  ;;  %s210_s20 = scalar_lea.vmem [#allocation8], %s340_s27 }
  0x6a   : > { %554 = vsyncadd (%p842_p11), [#allocation6], 4294967040  ;;  %416 = vset.pattern.permute.xlu0 %v578_v0  ;;  %s243_s24 = sshll.u32 %s210_s20, 4  ;;  %vm227_vm0 = vcmask 130048   ;;  %s781_s28 = scalar_lea.hbm %s828_s3, %s345_s18  ;;  %s783_s24 = int_to_ptr.vmem [resolvable:$true] %s243_s24 }
  0x6b   : > { %215 = vperm.xlu0 %416, %v212_v1   ;;  %s230_s22 = scalar_lea.sflag [#allocation4], %s765_s17  ;;  %s503_s4 = scalar_lea.vmem %s783_s24, 128 }
  0x6c   : > { %p504_p2 = scmp.ne.s32.totalorder %s783_s24, %s503_s4  ;;  %s579_s16 = smov [#allocation8]  }
  0x6d   : > { %s507_s5 = sshll.u32 %s579_s16, 4  ;;  %s508_s5 = int_to_ptr.vmem [resolvable:$false] %s507_s5 }
  0x6e   : > { %p505_p1 = pnand %p504_p2, %p719_p6  ;;  %s509_s6 = scalar_lea.vmem %s508_s5, 256 }
  0x6f   : > { %222 = vperm.xlu0 %416, %v219_v2   ;;  %p510_p8 = scmp.lt.s32.totalorder %s783_s24, %s508_s5  ;;  %p511_p12 = scmp.lt.s32.totalorder %s509_s6, %s503_s4 }
  0x70   : > { %p506_p4 = pneg %p505_p1 }
  0x71   : > { %p512_p3 = por %p511_p12, %p510_p8 }
  0x73   : > { %p513_p7 = pnand %p512_p3, %p506_p4 }
  0xea   : > { %v216_v3 = vpop.permute.xlu0 %215 }
  0xeb   : > { %v218_v5 = vmul.f32 %v216_v3, %v211_v4 }
  0xee   : > { %v223_v6 = vpop.permute.xlu0 %222 }
  0xef   : > { %v225_v7 = vadd.f32 %v223_v6, %v218_v5 }
  0xf1   : > { %v226_v8 = vmax.f32 %v225_v7, 0.0 }
  0xf3   : > { %228 = vst.msk [vmem:[%s210_s20] sm:$0xff] %vm227_vm0, %v226_v8 }
  0xf4   : > { %516 = shalt.err (!%p513_p7)
}
  0xf5   : > { %s517_s8 = scalar_lea.hbm %s781_s28, 128  ;;  %s521_s11 = scalar_lea.hbm %s828_s3, 256 }
  0xf6   : > { %p518_p10 = scmp.ne.s32.totalorder %s781_s28, %s517_s8  ;;  %p522_p0 = scmp.lt.u32.totalorder %s781_s28, %s828_s3 }
  0xf7   : > { %p523_p9 = scmp.lt.u32.totalorder %s521_s11, %s517_s8  ;;  %p525_p2 = scmp.lt.u32.totalorder %s517_s8, %s781_s28 }
  0xf8   : > { %p519_p13 = pnand %p518_p10, %p719_p6 }
  0xf9   : > { %p524_p11 = por %p523_p9, %p522_p0 }
  0xfa   : > { %p520_p5 = pneg %p519_p13 }
  0xfb   : > { %p526_p1 = por %p525_p2, %p524_p11 }
  0xfd   : > { %p527_p4 = pnand %p526_p1, %p520_p5 }
  0xff   : > { %530 = shalt.err (!%p527_p4)
}
 0x100   : > { %358 = dma.vmem_to_hbm [thread:$0]  (%p719_p6), %s783_s24, 128, %s781_s28, %s230_s22  }
 0x101 PF: > { %s255_s29 = sand.u32 1, %s561_s12   ;;  %p843_p8 = scmp.ne.s32.totalorder %s833_s19, 0 }
 0x102   : > { %p844_p12 = scmp.ge.s32.totalorder %s573_s15, 2  ;;  %s256_s30 = scalar_lea.sflag [#allocation4], %s255_s29 }
 0x104   : > { %p372_p3 = pnand %p844_p12, %p843_p8 }
 0x106   : > { %556 = dma.done.wait (!%p372_p3), %s256_s30, 128  }
 0x107   : > { %558 = vsyncadd (!%p372_p3), %s256_s30, 4294967168  ;;  %p17_p7 = scmp.ge.s32.totalorder %s656_s26, 4   ;;  %s845_s12 = smov %s565_s13 }
 0x108   : > { %s846_s13 = smov %s569_s14  ;;  %s847_s14 = smov %s715_s25 }
 0x109   : > { %s848_s15 = smov %s656_s26  ;;  %19 = sbr.rel (!%p17_p7) target bundleno = 6 (0x6), region = 85 }
 0x110   :  { %261 = vsyncpa [#allocation3], 1 }
 0x111   :  { %263 = vsyncpa [#allocation3 + $0x1], 1 }
 0x112   :  { %264 = vsyncpa [#allocation6], 1 }
 0x113   :  { %265 = vsyncpa [#allocation4], 1 }
 0x114   :  { %267 = vsyncpa [#allocation4 + $0x1], 1 }

// kernel: double_conv_pallas.4
= control target key start
LH: loop header
LB: loop body
LE: loop exit
PB: predicated region body
PF: predicated region fallthrough
CT: control target
= control target key end

     0   :  { %11 = vsyncpa [#allocation4], 0  ;;  %s1616_s0 = inlined_call_operand.hbm [shape: f32[2,8,16], index: 0, kind: input, shape index: {}]   ;;  %s1617_s1 = inlined_call_operand.hbm [shape: f32[8,1], index: 1, kind: input, shape index: {}]   ;;  %s1618_s2 = inlined_call_operand.hbm [shape: f32[8,1], index: 2, kind: input, shape index: {}]   ;;  %s1619_s3 = inlined_call_operand.hbm [shape: f32[5,8,8], index: 3, kind: input, shape index: {}]   ;;  %s1620_s4 = inlined_call_operand.hbm [shape: f32[2,8,16], index: 4, kind: output, shape index: {0}]   ;;  %s1621_s5 = inlined_call_operand.hbm [shape: f32[2,16,1], index: 5, kind: output, shape index: {1}]  }
   0x1   :  { %13 = vsyncpa [#allocation4 + $0x1], 0 }
   0x2   :  { %14 = vsyncpa [#allocation7], 0 }
   0x3   :  { %15 = vsyncpa [#allocation10], 0 }
   0x4   :  { %16 = vsyncpa [#allocation5], 0 }
   0x5   :  { %18 = vsyncpa [#allocation5 + $0x1], 0 }
   0x6   :  { %19 = vsyncpa [#allocation13], 0 }
   0x7   :  { %21 = vsyncpa [#allocation13 + $0x1], 0  ;;  %s1324_s18 = smov 0   ;;  %s1326_s19 = smov 0  }
   0x8   :  { %s1328_s20 = smov 0   ;;  %s1330_s21 = smov 0  }
   0x9 LB: > { %s1345_s22 = sadd.s32 4294967295, %s1274_s21   ;;  %s889_s23 = sadd.s32 4294967294, %s1274_s21   ;;  %s1274_s21 = sphi %s1330_s21, %s1644_s21   ;;  %s1270_s20 = sphi %s1328_s20, %s1643_s20   ;;  %s1266_s19 = sphi %s1326_s19, %s1642_s19   ;;  %s1262_s18 = sphi %s1324_s18, %s1641_s18  }
   0xa   : > { %p47_p0 = scmp.ne.s32.totalorder %s1266_s19, %s1262_s18  ;;  %p1622_p1 = scmp.eq.s32.totalorder %s1345_s22, 0 }
   0xb   : > { %p140_p3 = scmp.eq.s32.totalorder %s889_s23, 1  ;;  %p890_p5 = scmp.ge.s32.totalorder %s1274_s21, 1 }
   0xc   : > { %p1354_p4 = por %p1622_p1, %p47_p0  ;;  %p173_p7 = scmp.lt.s32.totalorder %s1274_s21, 3 }
   0xd   : > { %p1359_p6 = por %p140_p3, %p47_p0  ;;  %s1276_s27 = smov [#allocation6]  }
   0xe   : > { %s1625_s24 = scalar_select %p1354_p4, 1, 0 }
   0xf   : > { %s1626_s25 = scalar_select %p1359_p6, 1, 0 }
  0x10   : > { %p1364_p8 = pnand %p890_p5, %p173_p7  ;;  %s186_s28 = sshll.u32 %s1276_s27, 4  ;;  %s187_s28 = int_to_ptr.vmem [resolvable:$true] %s186_s28 }
  0x11   : > { %s1277_s29 = smov [#allocation8]   ;;  %s1278_s7 = smov [#allocation9]  }
  0x12   : > { %s1627_s26 = scalar_select %p1364_p8, 1, 0 }
  0x13   : > { %p977_p10 = pneg %p1364_p8  ;;  %s197_s30 = sshll.u32 %s1277_s29, 4  ;;  %s1377_s30 = int_to_ptr.vmem [resolvable:$true] %s197_s30 }
  0x14   : > { %s207_s8 = sshll.u32 %s1278_s7, 4  ;;  %s1054_s11 = scalar_lea.hbm %s1617_s1, 128  ;;  %s1379_s8 = int_to_ptr.vmem [resolvable:$true] %s207_s8 }
  0x15   : > { %p1373_p11 = pnand %p977_p10, %p1622_p1  ;;  %p1055_p12 = scmp.ne.s32.totalorder %s1617_s1, %s1054_s11 }
  0x16   : > { %p1061_p5 = scmp.lt.u32.totalorder %s1054_s11, %s1617_s1 }
  0x17   : > { %p1389_p13 = pneg %p1373_p11 }
  0x19   : > { %p1057_p0 = pnand %p1389_p13, %p1055_p12 }
  0x1b   : > { %p1058_p3 = pneg %p1057_p0 }
  0x1d   : > { %p1063_p7 = pnand %p1061_p5, %p1058_p3 }
  0x1f   : > { %1066 = shalt.err (!%p1063_p7)
}
  0x20   : > { %s1067_s17 = scalar_lea.vmem %s187_s28, 128  ;;  %p1075_p2 = scmp.lt.s32.totalorder %s187_s28, %s187_s28 }
  0x21   : > { %p1068_p10 = scmp.ne.s32.totalorder %s187_s28, %s1067_s17  ;;  %p1076_p6 = scmp.lt.s32.totalorder %s1067_s17, %s1067_s17 }
  0x23   : > { %p1070_p9 = pnand %p1068_p10, %p1389_p13  ;;  %p1077_p4 = por %p1076_p6, %p1075_p2 }
  0x25   : > { %p1071_p1 = pneg %p1070_p9 }
  0x27   : > { %p1078_p8 = pnand %p1077_p4, %p1071_p1 }
  0x29   : > { %1081 = shalt.err (!%p1078_p8)
}
  0x2a   : > { %980 = dma.hbm_to_vmem [thread:$0]  (!%p1373_p11), %s1617_s1, 128, %s187_s28, [#allocation7]  }
  0x2b   : > { %s1082_s9 = scalar_lea.hbm %s1618_s2, 128 }
  0x2c   : > { %p1083_p9 = scmp.ne.s32.totalorder %s1618_s2, %s1082_s9  ;;  %p1089_p1 = scmp.lt.u32.totalorder %s1082_s9, %s1618_s2 }
  0x2e   : > { %p1085_p12 = pnand %p1083_p9, %p1389_p13 }
  0x30   : > { %p1086_p2 = pneg %p1085_p12 }
  0x32   : > { %p1091_p4 = pnand %p1089_p1, %p1086_p2 }
  0x34   : > { %1094 = shalt.err (!%p1091_p4)
}
  0x35   : > { %s1095_s28 = scalar_lea.vmem %s1377_s30, 128  ;;  %p1103_p3 = scmp.lt.s32.totalorder %s1377_s30, %s1377_s30 }
  0x36   : > { %p1096_p6 = scmp.ne.s32.totalorder %s1377_s30, %s1095_s28  ;;  %p1104_p5 = scmp.lt.s32.totalorder %s1095_s28, %s1095_s28 }
  0x38   : > { %p1098_p8 = pnand %p1096_p6, %p1389_p13  ;;  %p1105_p7 = por %p1104_p5, %p1103_p3 }
  0x3a   : > { %p1099_p0 = pneg %p1098_p8 }
  0x3c   : > { %p1106_p10 = pnand %p1105_p7, %p1099_p0 }
  0x3e   : > { %1109 = shalt.err (!%p1106_p10)
}
  0x3f   : > { %983 = dma.hbm_to_vmem [thread:$0]  (!%p1373_p11), %s1618_s2, 128, %s1377_s30, [#allocation7]  }
  0x40   : > { %s1110_s27 = scalar_lea.hbm %s1619_s3, 640 }
  0x41   : > { %p1111_p9 = scmp.ne.s32.totalorder %s1619_s3, %s1110_s27  ;;  %p1117_p1 = scmp.lt.u32.totalorder %s1110_s27, %s1619_s3 }
  0x43   : > { %p1113_p12 = pnand %p1111_p9, %p1389_p13 }
  0x45   : > { %p1114_p2 = pneg %p1113_p12 }
  0x47   : > { %p1119_p4 = pnand %p1117_p1, %p1114_p2 }
  0x49   : > { %1122 = shalt.err (!%p1119_p4)
}
  0x4a   : > { %s1123_s30 = scalar_lea.vmem %s1379_s8, 640  ;;  %p1131_p3 = scmp.lt.s32.totalorder %s1379_s8, %s1379_s8 }
  0x4b   : > { %p1124_p6 = scmp.ne.s32.totalorder %s1379_s8, %s1123_s30  ;;  %p1132_p5 = scmp.lt.s32.totalorder %s1123_s30, %s1123_s30 }
  0x4d   : > { %p1126_p8 = pnand %p1124_p6, %p1389_p13  ;;  %p1133_p7 = por %p1132_p5, %p1131_p3 }
  0x4f   : > { %p1127_p0 = pneg %p1126_p8 }
  0x51   : > { %p1134_p10 = pnand %p1133_p7, %p1127_p0 }
  0x53   : > { %1137 = shalt.err (!%p1134_p10)
}
  0x54   : > { %s1279_s11 = smov 128   ;;  %s1280_s14 = smov 8  }
  0x55   : > { %986 = dma.hbm_to_vmem [thread:$0]  (!%p1373_p11), %s1619_s3, 640, %s1379_s8, [#allocation10], %s1279_s11, %s1279_s11, %s1280_s14  }
  0x56   : > { %s1452_s28 = sadd.s32 1, %s1274_s21   ;;  %s34_s16 = sadd.s32 1, %s1270_s20 }
  0x57   : > { %s31_s15 = ssub.s32 %s1274_s21, %s1452_s28  ;;  %p41_p9 = scmp.ne.s32.totalorder %s1270_s20, %s1266_s19 }
  0x58   : > { %p32_p13 = scmp.eq.s32.totalorder %s31_s15, 0  ;;  %p42_p12 = scmp.eq.s32.totalorder %s1274_s21, 0 }
  0x59   : > { %p1001_p2 = scmp.lt.s32.totalorder %s1274_s21, 2  ;;  %p1630_p4 = scmp.eq.s32.totalorder %s1345_s22, 1 }
  0x5a   : > { %s1462_s17 = scalar_select %p32_p13, %s1270_s20, %s34_s16  }
  0x5b   : > { %p43_p1 = por %p42_p12, %p41_p9  ;;  %p1466_p6 = por %p1630_p4, %p41_p9 }
  0x5c   : > { %s221_s6 = sand.u32 1, %s1270_s20   ;;  %s896_s27 = sshll.u32 %s1274_s21, 7 }
  0x5d   : > { %s895_s8 = sshll.u32 %s221_s6, 3  ;;  %s1475_s9 = scalar_lea.hbm %s1616_s0, %s896_s27 }
  0x5e   : > { %s225_s10 = scalar_lea.vmem [#allocation3], %s895_s8  ;;  %p1477_p11 = pnand %p1001_p2, %p43_p1 }
  0x5f   : > { %s232_s30 = sshll.u32 %s225_s10, 4  ;;  %s222_s14 = scalar_lea.sflag [#allocation4], %s221_s6  ;;  %s1481_s30 = int_to_ptr.vmem [resolvable:$true] %s232_s30 }
  0x60   : > { %s1138_s12 = scalar_lea.hbm %s1475_s9, 128  ;;  %p1140_p0 = pneg %p1477_p11 }
  0x61   : > { %p1139_p8 = scmp.ne.s32.totalorder %s1475_s9, %s1138_s12  ;;  %s1143_s16 = scalar_lea.hbm %s1616_s0, 256 }
  0x62   : > { %p1144_p7 = scmp.lt.u32.totalorder %s1475_s9, %s1616_s0  ;;  %p1145_p10 = scmp.lt.u32.totalorder %s1143_s16, %s1138_s12 }
  0x63   : > { %p1141_p3 = pnand %p1140_p0, %p1139_p8  ;;  %p1147_p9 = scmp.lt.u32.totalorder %s1138_s12, %s1475_s9 }
  0x64   : > { %p1146_p13 = por %p1145_p10, %p1144_p7 }
  0x65   : > { %p1142_p5 = pneg %p1141_p3 }
  0x66   : > { %p1148_p12 = por %p1147_p9, %p1146_p13 }
  0x68   : > { %p1149_p2 = pnand %p1148_p12, %p1142_p5 }
  0x6a   : > { %1152 = shalt.err (!%p1149_p2)
}
  0x6b   : > { %s1153_s6 = scalar_lea.vmem %s1481_s30, 128  ;;  %s1281_s29 = smov [#allocation3]  }
  0x6c   : > { %p1154_p1 = scmp.ne.s32.totalorder %s1481_s30, %s1153_s6  ;;  %s1158_s7 = sshll.u32 %s1281_s29, 4  ;;  %s1159_s7 = int_to_ptr.vmem [resolvable:$false] %s1158_s7 }
  0x6d   : > { %s1160_s10 = scalar_lea.vmem %s1159_s7, 256  ;;  %p1161_p3 = scmp.lt.s32.totalorder %s1481_s30, %s1159_s7 }
  0x6e   : > { %p1156_p4 = pnand %p1154_p1, %p1140_p0  ;;  %p1162_p7 = scmp.lt.s32.totalorder %s1160_s10, %s1153_s6 }
  0x70   : > { %p1157_p8 = pneg %p1156_p4  ;;  %p1163_p10 = por %p1162_p7, %p1161_p3 }
  0x72   : > { %p1164_p13 = pnand %p1163_p10, %p1157_p8 }
  0x74   : > { %1167 = shalt.err (!%p1164_p13)
}
  0x75   : > { %990 = dma.hbm_to_vmem [thread:$0]  (!%p1477_p11), %s1475_s9, 128, %s1481_s30, %s222_s14  }
  0x76   : > { %p1633_p5 = scmp.ne.s32.totalorder %s1627_s26, 0 }
  0x77   : > { %s1511_s12 = sand.u32 (!%p1633_p5), 1, %s1266_s19   ;;  %p1634_p0 = scmp.ne.s32.totalorder (!%p1633_p5), %s1625_s24, 0 }
  0x78   : > { %241 = sbr.rel (%p1633_p5) target bundleno = 902 (0x386), region = 36  ;;  %s898_s13 = sshll.u32 (!%p1633_p5), %s1511_s12, 3 }
  0x79   : > { %s244_s15 = scalar_lea.sflag (!%p1633_p5), [#allocation4], %s1511_s12  ;;  %s247_s16 = scalar_lea.vmem (!%p1633_p5), [#allocation3], %s898_s13 }
  0x7f   : > { %1241 = dma.done.wait (%p1634_p0), %s244_s15, 128  }
  0x80   : > { %1243 = vsyncadd (%p1634_p0), %s244_s15, 4294967168  ;;  %p1635_p11 = scmp.eq.s32.totalorder %s1345_s22, 0 }
  0x82   : > { %1245 = dma.done.wait (%p1635_p11), [#allocation7], 256   ;;  %p1636_p9 = pmov %p1635_p11 }
  0x84   : > { %1247 = vsyncadd (%p1636_p9), [#allocation7], 4294967040  ;;  %p1637_p12 = pmov %p1636_p9 }
  0x85   : > { %p1638_p2 = pmov %p1636_p9 }
  0x86   : > { %1249 = dma.done.wait (%p1637_p12), [#allocation10], 640  }
  0x87   : > { %1251 = vsyncadd (%p1638_p2), [#allocation10], 4294966656  ;;  %v1282_v0 = vmov 0   ;;  %v296_v1 = vld [vmem:[#allocation6] sm:$0xff]  ;;  %v303_v2 = vld [vmem:[#allocation8] sm:$0xff]  ;;  %vm291_vm0 = vcmask 15360  }
  0x88   : > { %1053 = vset.pattern.permute.xlu0 %v1282_v0  ;;  %vm293_vm1 = vcmask 162960   ;;  %v1283_v3 = vmov 0.0   ;;  %v295_v5 = vld [vmem:[%s247_s16] sm:$0xff]  ;;  %s1284_s24 = smov 2   ;;  %vm1285_vm2 = vmmov 0   ;;  %vm315_vm3 = vcmask 146448  }
  0x89   : > { %299 = vperm.xlu0 %1053, %v296_v1   ;;  %292 = vst.msk [vmem:[#allocation2] sm:$0xff] %vm291_vm0, %v1283_v3  ;;  %927 = vmatprep.subr.mxu1 %v1283_v3  ;;  %s1286_s26 = smov 127   ;;  %s1287_s9 = smov 126   ;;  %vm325_vm4 = vcmask 64512   ;;  %v473_v12 = vld [vmem:[#allocation9 + $0x10] sm:$0xff]  ;;  %v320_v15 = vld [vmem:[#allocation9 + $0x8] sm:$0xff] }
  0x8a   : > { %937 = vmatprep.subr.mxu0 %v1283_v3  ;;  %294 = vst.msk [vmem:[#allocation2] sm:$0xff] %vm293_vm1, %v1283_v3  ;;  %939 = vmatprep.mubr.msk.f32.mxu0 %vm1285_vm2, %v1283_v3  ;;  %s1288_s30 = smov 124   ;;  %s1289_s11 = smov 125   ;;  %v552_v17 = vld [vmem:[#allocation9 + $0x18] sm:$0xff]  ;;  %v317_v18 = vld [vmem:[#allocation9] sm:$0xff]  ;;  %vm709_vm5 = vcmask 130048  }
  0x8b   : > { %929 = vmatprep.mubr.msk.f32.mxu1 %vm1285_vm2, %v1283_v3  ;;  %v631_v20 = vld [vmem:[#allocation9 + $0x20] sm:$0xff]  ;;  %s283_s14 = scalar_lea.vmem [#allocation11], %s898_s13  ;;  %s911_s27 = sshll.u32 %s1345_s22, 7 }
  0x8c   : > { %s1545_s29 = scalar_lea.hbm %s1620_s4, %s911_s27  ;;  %s742_s7 = sshll.u32 %s283_s14, 4  ;;  %s743_s7 = int_to_ptr.vmem [resolvable:$true] %s742_s7 }
  0x8d   : > { %306 = vperm.xlu0 %1053, %v303_v2   ;;  %s724_s10 = scalar_lea.sflag [#allocation5], %s1511_s12  ;;  %s1168_s15 = scalar_lea.vmem %s743_s7, 128 }
  0x8e   : > { %p1169_p1 = scmp.ne.s32.totalorder %s743_s7, %s1168_s15  ;;  %s1290_s16 = smov [#allocation11]  }
  0x8f   : > { %s1172_s13 = sshll.u32 %s1290_s16, 4  ;;  %s1173_s13 = int_to_ptr.vmem [resolvable:$false] %s1172_s13 }
  0x90   : > { %p1170_p4 = pnand %p1169_p1, %p1466_p6  ;;  %p1175_p3 = scmp.lt.s32.totalorder %s743_s7, %s1173_s13 }
  0x92   : > { %p1171_p8 = pneg %p1170_p4 }
 0x108   : > { %v300_v4 = vpop.permute.xlu0 %299 }
 0x109   : > { %v302_v6 = vmul.f32 %v300_v4, %v295_v5 }
 0x10c   : > { %v307_v7 = vpop.permute.xlu0 %306 }
 0x10d   : > { %v309_v8 = vadd.f32 %v307_v7, %v302_v6 }
 0x10f   : > { %v310_v9 = vmax.f32 %v309_v8, 0.0 }
 0x111   : > { %312 = vrot.lane.b32.xlu1 %v310_v9, %s1284_s24  ;;  %s1174_s24 = scalar_lea.vmem %s1173_s13, 256 }
 0x112   : > { %p1176_p7 = scmp.lt.s32.totalorder %s1174_s24, %s1168_s15 }
 0x114   : > { %p1177_p10 = por %p1176_p7, %p1175_p3 }
 0x116   : > { %p1178_p13 = pnand %p1177_p10, %p1171_p8 }
 0x183   : > { %v313_v10 = vpop.permute.xlu1 %312 }
 0x184   : > { %316 = vst.msk [vmem:[#allocation2] sm:$0xff] %vm315_vm3, %v313_v10 }
 0x18b   : > { %v318_v11 = vld [vmem:[#allocation2] sm:$0xff] }
 0x18c   : > { %322 = vrot.lane.b32.xlu0 %v318_v11, %s1286_s26  ;;  %474 = vrot.lane.b32.xlu1 %v318_v11, %s1287_s9 }
 0x190   : > { %632 = vrot.lane.b32.xlu0 %v318_v11, %s1288_s30  ;;  %553 = vrot.lane.b32.xlu1 %v318_v11, %s1289_s11 }
 0x1fe   : > { %v323_v13 = vpop.permute.xlu0 %322  ;;  %v475_v14 = vpop.permute.xlu1 %474 }
 0x1ff   : > { %928 = vmatpush3.msra.mxu1 %v323_v13  ;;  %938 = vmatpush3.msra.mxu0 %v475_v14 }
 0x200   : > { %932 = vmatprep.subr.mxu1 %v1283_v3  ;;  %940 = vmatmul.mubr.msk.f32.vlgmr.msra.gmra.mrb[0].mxu0 %vm325_vm4, %v473_v12 }
 0x201   : > { %930 = vmatmul.mubr.msk.f32.vlgmr.msra.gmra.mrb[0].mxu1 %vm325_vm4, %v320_v15  ;;  %942 = vmatprep.subr.mxu0 %v1283_v3 }
 0x202   : > { %933 = vmatpush3.msra.mxu1 %v318_v11  ;;  %v554_v16 = vpop.permute.xlu1 %553  ;;  %944 = vmatprep.mubr.msk.f32.mxu0 %vm1285_vm2, %v1283_v3  ;;  %v633_v19 = vpop.permute.xlu0 %632 }
 0x203   : > { %943 = vmatpush3.msra.mxu0 %v554_v16  ;;  %934 = vmatprep.mubr.msk.f32.mxu1 %vm1285_vm2, %v1283_v3 }
 0x204   : > { %947 = vmatprep.subr.mxu0 %v1283_v3 }
 0x208   : > { %945 = vmatmul.mubr.msk.f32.vlgmr.msra.gmra.mrb[0].mxu0 %vm325_vm4, %v552_v17 }
 0x209   : > { %948 = vmatpush3.msra.mxu0 %v633_v19  ;;  %935 = vmatmul.mubr.msk.f32.vlgmr.msra.gmra.mrb[0].mxu1 %vm325_vm4, %v317_v18 }
 0x20a   : > { %949 = vmatprep.mubr.msk.f32.mxu0 %vm1285_vm2, %v1283_v3 }
 0x210   : > { %950 = vmatmul.mubr.msk.f32.vlgmr.msra.gmra.mrb[0].mxu0 %vm325_vm4, %v631_v20 }
 0x2dc   : > { %v468_v21 = vpop.f32.mrb[0].mxu1 }
 0x2dd   : > { %v936_v22 = vpop.f32.mrb[1].mxu1 }
 0x2e3   : > { %v704_v23 = vpop.f32.mrb[0].mxu0 }
 0x2e4   : > { %v952_v24 = vadd.f32 %v704_v23, %v468_v21  ;;  %v951_v25 = vpop.f32.mrb[1].mxu0 }
 0x2e6   : > { %v711_v26 = vsel %vm709_vm5, %v952_v24, 0.0  ;;  %v715_v27 = vmul.f32 %v952_v24, %v952_v24  ;;  %710 = vst.msk [vmem:[%s283_s14] sm:$0xff] %vm709_vm5, %v952_v24 }
 0x2e7   : > { %712 = vadd.xlane.f32.xlu1 %v711_v26 }
 0x2e8   : > { %v716_v28 = vsel %vm709_vm5, %v715_v27, 0.0 }
 0x2e9   : > { %717 = vadd.xlane.f32.xlu0 %v716_v28 }
 0x2ea   : > { %1181 = shalt.err (!%p1178_p13)
}
 0x2eb   : > { %s1182_s26 = scalar_lea.hbm %s1545_s29, 128  ;;  %s1186_s11 = scalar_lea.hbm %s1620_s4, 256 }
 0x2ec   : > { %p1183_p5 = scmp.ne.s32.totalorder %s1545_s29, %s1182_s26  ;;  %p1187_p9 = scmp.lt.u32.totalorder %s1545_s29, %s1620_s4 }
 0x2ed   : > { %p1188_p12 = scmp.lt.u32.totalorder %s1186_s11, %s1182_s26  ;;  %p1190_p1 = scmp.lt.u32.totalorder %s1182_s26, %s1545_s29 }
 0x2ee   : > { %p1184_p0 = pnand %p1183_p5, %p1466_p6 }
 0x2ef   : > { %p1189_p2 = por %p1188_p12, %p1187_p9 }
 0x2f0   : > { %p1185_p11 = pneg %p1184_p0 }
 0x2f1   : > { %p1191_p4 = por %p1190_p1, %p1189_p2 }
 0x2f3   : > { %p1192_p8 = pnand %p1191_p4, %p1185_p11 }
 0x2f5   : > { %1195 = shalt.err (!%p1192_p8)
}
 0x2f6   : > { %973 = dma.vmem_to_hbm [thread:$0]  (%p1466_p6), %s743_s7, 128, %s1545_s29, %s724_s10   ;;  %vm720_vm6 = vcmask 7168  }
 0x2f7   : > { %s903_s8 = sshll.u32 %s1511_s12, 4  ;;  %s916_s16 = sshll.u32 %s1345_s22, 8 }
 0x2f8   : > { %s290_s6 = scalar_lea.vmem [#allocation12], %s903_s8  ;;  %s1572_s26 = scalar_lea.hbm %s1621_s5, %s916_s16 }
 0x2f9   : > { %s755_s15 = sshll.u32 %s290_s6, 4  ;;  %s729_s29 = scalar_lea.sflag [#allocation13], %s1511_s12  ;;  %s1567_s15 = int_to_ptr.vmem [resolvable:$true] %s755_s15 }
 0x2fa   : > { %s1196_s7 = scalar_lea.vmem %s1567_s15, 256  ;;  %s1291_s22 = smov [#allocation12]  }
 0x2fb   : > { %p1197_p3 = scmp.ne.s32.totalorder %s1567_s15, %s1196_s7  ;;  %s1200_s10 = sshll.u32 %s1291_s22, 4  ;;  %s1201_s10 = int_to_ptr.vmem [resolvable:$false] %s1200_s10 }
 0x2fc   : > { %s1202_s9 = scalar_lea.vmem %s1201_s10, 512  ;;  %p1203_p13 = scmp.lt.s32.totalorder %s1567_s15, %s1201_s10 }
 0x2fd   : > { %p1198_p7 = pnand %p1197_p3, %p1466_p6  ;;  %p1204_p5 = scmp.lt.s32.totalorder %s1202_s9, %s1196_s7 }
 0x2ff   : > { %p1199_p10 = pneg %p1198_p7  ;;  %p1205_p0 = por %p1204_p5, %p1203_p13 }
 0x301   : > { %p1206_p11 = pnand %p1205_p0, %p1199_p10 }
 0x374   : > { %v713_v29 = vpop.xlane.xlu1 %712 }
 0x375   : > { %721 = vst.msk [vmem:[%s290_s6] sm:$0xff] %vm720_vm6, %v713_v29 }
 0x376   : > { %v718_v30 = vpop.xlane.xlu0 %717 }
 0x377   : > { %722 = vst.msk [vmem:[%s290_s6 + $0x8] sm:$0xff] %vm720_vm6, %v718_v30 }
 0x378   : > { %1209 = shalt.err (!%p1206_p11)
}
 0x379   : > { %s1210_s30 = scalar_lea.hbm %s1572_s26, 256  ;;  %s1214_s27 = scalar_lea.hbm %s1621_s5, 512 }
 0x37a   : > { %p1211_p9 = scmp.ne.s32.totalorder %s1572_s26, %s1210_s30  ;;  %p1215_p1 = scmp.lt.u32.totalorder %s1572_s26, %s1621_s5 }
 0x37b   : > { %p1216_p4 = scmp.lt.u32.totalorder %s1214_s27, %s1210_s30  ;;  %p1218_p3 = scmp.lt.u32.totalorder %s1210_s30, %s1572_s26 }
 0x37c   : > { %p1212_p12 = pnand %p1211_p9, %p1466_p6 }
 0x37d   : > { %p1217_p8 = por %p1216_p4, %p1215_p1 }
 0x37e   : > { %p1213_p2 = pneg %p1212_p12 }
 0x37f   : > { %p1219_p7 = por %p1218_p3, %p1217_p8 }
 0x381   : > { %p1220_p10 = pnand %p1219_p7, %p1213_p2 }
 0x383   : > { %1223 = shalt.err (!%p1220_p10)
}
 0x384   : > { %s1292_s16 = smov 128   ;;  %s1293_s13 = smov 8  }
 0x385   : > { %974 = dma.vmem_to_hbm [thread:$0]  (%p1466_p6), %s1567_s15, 256, %s1572_s26, %s729_s29, %s1292_s16, %s1292_s16, %s1293_s13  }
 0x386 PF: > { %s770_s24 = sand.u32 1, %s1262_s18   ;;  %p1639_p13 = scmp.ne.s32.totalorder %s1626_s25, 0 }
 0x387   : > { %p1640_p5 = scmp.ge.s32.totalorder %s1274_s21, 2  ;;  %s771_s7 = scalar_lea.sflag [#allocation5], %s770_s24 }
 0x389   : > { %p992_p0 = pnand %p1640_p5, %p1639_p13 }
 0x38b   : > { %1253 = dma.done.wait (!%p992_p0), %s771_s7, 128  }
 0x38c   : > { %1255 = vsyncadd (!%p992_p0), %s771_s7, 4294967168  ;;  %s780_s22 = scalar_lea.sflag [#allocation13], %s770_s24 }
 0x38d   : > { %1257 = dma.done.wait (!%p992_p0), %s780_s22, 256  }
 0x38e   : > { %1259 = vsyncadd (!%p992_p0), %s780_s22, 4294967040  ;;  %p24_p6 = scmp.ge.s32.totalorder %s1452_s28, 4   ;;  %s1641_s18 = smov %s1266_s19 }
 0x38f   : > { %s1642_s19 = smov %s1270_s20  ;;  %s1643_s20 = smov %s1462_s17 }
 0x390   : > { %s1644_s21 = smov %s1452_s28  ;;  %26 = sbr.rel (!%p24_p6) target bundleno = 9 (0x9), region = 114 }
 0x397   :  { %785 = vsyncpa [#allocation4], 1 }
 0x398   :  { %787 = vsyncpa [#allocation4 + $0x1], 1 }
 0x399   :  { %788 = vsyncpa [#allocation7], 1 }
 0x39a   :  { %789 = vsyncpa [#allocation10], 1 }
 0x39b   :  { %790 = vsyncpa [#allocation5], 1 }
 0x39c   :  { %792 = vsyncpa [#allocation5 + $0x1], 1 }
 0x39d   :  { %793 = vsyncpa [#allocation13], 1 }
 0x39e   :  { %795 = vsyncpa [#allocation13 + $0x1], 1 }

</bundles_post_ra>
